<compile_context>
chip_gen: v6e
topology: v6e:2x2x1
jax: 0.10.0
libtpu: 0.0.40
codegen_flags: <defaults>
</compile_context>

<pallas_src>
import jax
import jax.numpy as jnp
from jax.experimental import pallas as pl
from jax.experimental.pallas import tpu as pltpu

BN_EPS = 1e-5


def _round_up(x, m):
    return (x + m - 1) // m * m


def _gan_gen_kernel(noise_ref,
                    w1_ref, b1_ref, g1_ref, be1_ref,
                    w2_ref, b2_ref, g2_ref, be2_ref,
                    w3_ref, b3_ref, g3_ref, be3_ref,
                    w4_hbm_ref, b4_ref, g4_ref, be4_ref,
                    w5_hbm_ref, b5_ref,
                    out_ref,
                    w4_vmem, w5_vmem, dma_sems):
    # Kick off the DMA of the two largest weights so it overlaps layers 1-3.
    cp_w4 = pltpu.make_async_copy(w4_hbm_ref, w4_vmem, dma_sems.at[0])
    cp_w5 = pltpu.make_async_copy(w5_hbm_ref, w5_vmem, dma_sems.at[1])
    cp_w4.start()
    cp_w5.start()

    inv_n = 1.0 / noise_ref.shape[0]

    def gen_block(x, w_bf16, b_ref, g_ref, be_ref):
        # Linear: bf16 x bf16 operands on the MXU, f32 accumulation.
        h = jnp.dot(x.astype(jnp.bfloat16), w_bf16,
                    preferred_element_type=jnp.float32) + b_ref[...]
        # BatchNorm1d (training mode): batch mean + biased variance via
        # E[h^2] - mu^2, statistics kept in f32.
        mu = jnp.sum(h, axis=0, keepdims=True) * inv_n
        mean_sq = jnp.sum(h * h, axis=0, keepdims=True) * inv_n
        var = mean_sq - mu * mu
        h = (h - mu) * jax.lax.rsqrt(var + BN_EPS)
        h = h * g_ref[...] + be_ref[...]
        # ReLU
        return jnp.maximum(h, 0.0)

    x = noise_ref[...]                       # already f32, no redundant cast
    x = gen_block(x, w1_ref[...], b1_ref, g1_ref, be1_ref)
    x = gen_block(x, w2_ref[...], b2_ref, g2_ref, be2_ref)
    x = gen_block(x, w3_ref[...], b3_ref, g3_ref, be3_ref)
    cp_w4.wait()
    x = gen_block(x, w4_vmem[...], b4_ref, g4_ref, be4_ref)
    cp_w5.wait()
    # Final Linear + Sigmoid (lane-dense, padded output slab).
    logits = jnp.dot(x.astype(jnp.bfloat16), w5_vmem[...],
                     preferred_element_type=jnp.float32) + b5_ref[...]
    out_ref[...] = pl.reciprocal(1.0 + jnp.exp(-logits), approx=True)


def init_gan_generator_params(key, z_dim=10, im_dim=784, hidden_dim=128):
    """Init matching the PyTorch module (Linear W ~ N(0, 0.02), b = 0,
    BN gamma = 1 / beta = 0), laid out for the kernel:
      * weights stored as (in_dim, out_dim) (nn.Linear weight transposed), bf16
      * w1 rows zero-padded to a multiple of 8 (sublane)
      * w5 / b5 columns zero-padded to a multiple of 128 (lane-dense output)
    Returns [w1,b1,g1,be1, w2,b2,g2,be2, w3,b3,g3,be3, w4,b4,g4,be4, w5,b5].
    """
    z_pad = _round_up(z_dim, 8)
    im_pad = _round_up(im_dim, 128)
    dims_in = [z_dim, hidden_dim, hidden_dim * 2, hidden_dim * 4, hidden_dim * 8]
    dims_out = [hidden_dim, hidden_dim * 2, hidden_dim * 4, hidden_dim * 8, im_dim]
    params = []
    keys = jax.random.split(key, 5)
    for li in range(5):
        in_d, out_d = dims_in[li], dims_out[li]
        w = 0.02 * jax.random.normal(keys[li], (in_d, out_d), dtype=jnp.float32)
        b = jnp.zeros((1, out_d), dtype=jnp.float32)
        if li == 0 and z_pad != z_dim:
            w = jnp.pad(w, ((0, z_pad - z_dim), (0, 0)))
        if li == 4 and im_pad != im_dim:
            w = jnp.pad(w, ((0, 0), (0, im_pad - im_dim)))
            b = jnp.pad(b, ((0, 0), (0, im_pad - im_dim)))
        params.append(w.astype(jnp.bfloat16))
        params.append(b)
        if li < 4:  # BatchNorm affine params for the 4 hidden blocks
            params.append(jnp.ones((1, out_d), dtype=jnp.float32))   # gamma
            params.append(jnp.zeros((1, out_d), dtype=jnp.float32))  # beta
    return params


def gan_generator_forward(noise, params, im_dim):
    batch, z_dim = noise.shape
    z_pad = params[0].shape[0]    # padded z rows of w1
    im_pad = params[16].shape[1]  # padded output lanes of w5
    if z_pad != z_dim:
        noise = jnp.pad(noise, ((0, 0), (0, z_pad - z_dim)))

    vmem_spec = pl.BlockSpec(memory_space=pltpu.MemorySpace.VMEM)
    any_spec = pl.BlockSpec(memory_space=pl.ANY)
    # w4 (params[12]) and w5 (params[16]) stay in HBM and are DMA'd in-kernel.
    in_specs = [vmem_spec]
    for i in range(len(params)):
        in_specs.append(any_spec if i in (12, 16) else vmem_spec)

    # Cost hint for the XLA scheduler around this custom call.
    flops = 0
    bytes_accessed = noise.size * 4 + batch * im_pad * 4
    for p in params:
        bytes_accessed += p.size * p.dtype.itemsize
    for wi in (0, 4, 8, 12, 16):
        w = params[wi]
        flops += 2 * batch * w.shape[0] * w.shape[1]
    cost = pl.CostEstimate(flops=flops,
                           transcendentals=batch * im_pad,
                           bytes_accessed=bytes_accessed)

    # VMEM budget: resident params + activations + the two weight scratch
    # buffers, ~2x headroom, capped well below v7x's 64 MiB physical VMEM.
    max_width = max(p.shape[-1] for p in params)
    act_bytes = batch * max_width * 4 * 6
    scratch_bytes = (params[12].size + params[16].size) * 2
    resident = (sum(p.size * p.dtype.itemsize for p in params)
                + noise.size * 4 + batch * im_pad * 4 + scratch_bytes)
    vmem_limit = int(min(max((resident + act_bytes) * 2, 8 << 20), 32 << 20))

    out = pl.pallas_call(
        _gan_gen_kernel,
        out_shape=jax.ShapeDtypeStruct((batch, im_pad), jnp.float32),
        in_specs=in_specs,
        out_specs=vmem_spec,
        scratch_shapes=[
            pltpu.VMEM(params[12].shape, jnp.bfloat16),   # w4 VMEM buffer
            pltpu.VMEM(params[16].shape, jnp.bfloat16),   # w5 VMEM buffer
            pltpu.SemaphoreType.DMA((2,)),
        ],
        compiler_params=pltpu.CompilerParams(vmem_limit_bytes=vmem_limit),
        cost_estimate=cost,
    )(noise, *params)
    # Drop the lane padding (im_pad -> im_dim) outside the kernel.
    return out[:, :im_dim]


def gan_generator_ref(noise, params, im_dim):
    """Pure-JAX reference mirroring the kernel's numerics (bf16 matmul operands,
    f32 accumulation, f32 BN statistics)."""
    z_pad = params[0].shape[0]
    if z_pad != noise.shape[1]:
        noise = jnp.pad(noise, ((0, 0), (0, z_pad - noise.shape[1])))
    x = noise.astype(jnp.float32)
    idx = 0
    for _ in range(4):
        w, b, g, be = params[idx], params[idx + 1], params[idx + 2], params[idx + 3]
        idx += 4
        h = jnp.dot(x.astype(jnp.bfloat16), w, preferred_element_type=jnp.float32) + b
        mu = jnp.mean(h, axis=0, keepdims=True)
        var = jnp.mean(h * h, axis=0, keepdims=True) - mu * mu
        x = jnp.maximum((h - mu) * jax.lax.rsqrt(var + BN_EPS) * g + be, 0.0)
    w, b = params[idx], params[idx + 1]
    logits = jnp.dot(x.astype(jnp.bfloat16), w, preferred_element_type=jnp.float32) + b
    return jax.nn.sigmoid(logits)[:, :im_dim]


if __name__ == "__main__":
    # Small shapes consistent with the module: noise (n_samples, z_dim).
    # batch is a multiple of 8 (f32 sublane); im_dim=784 exercises the 896-lane pad.
    batch, z_dim, hidden_dim, im_dim = 16, 10, 32, 784

    key = jax.random.PRNGKey(0)
    k_noise, k_params = jax.random.split(key)
    noise = jax.random.normal(k_noise, (batch, z_dim), dtype=jnp.float32)
    params = init_gan_generator_params(k_params, z_dim=z_dim, im_dim=im_dim,
                                       hidden_dim=hidden_dim)

    out = gan_generator_forward(noise, params, im_dim)
    out = jax.block_until_ready(out)

    ref = gan_generator_ref(noise, params, im_dim)
    assert out.shape == (batch, im_dim)
    assert jnp.allclose(out, ref, atol=2e-3, rtol=2e-3), \
        "Pallas output mismatch vs JAX reference"

    print("KERNEL_OK")
</pallas_src>

<mosaic_0001>
module attributes {stable_mosaic.version = 11 : i64} {
  func.func @_gan_gen_kernel(%arg0: memref<16x16xf32, #tpu.memory_space<vmem>>, %arg1: memref<16x32xbf16, #tpu.memory_space<vmem>>, %arg2: memref<1x32xf32, #tpu.memory_space<vmem>>, %arg3: memref<1x32xf32, #tpu.memory_space<vmem>>, %arg4: memref<1x32xf32, #tpu.memory_space<vmem>>, %arg5: memref<32x64xbf16, #tpu.memory_space<vmem>>, %arg6: memref<1x64xf32, #tpu.memory_space<vmem>>, %arg7: memref<1x64xf32, #tpu.memory_space<vmem>>, %arg8: memref<1x64xf32, #tpu.memory_space<vmem>>, %arg9: memref<64x128xbf16, #tpu.memory_space<vmem>>, %arg10: memref<1x128xf32, #tpu.memory_space<vmem>>, %arg11: memref<1x128xf32, #tpu.memory_space<vmem>>, %arg12: memref<1x128xf32, #tpu.memory_space<vmem>>, %arg13: memref<128x256xbf16, #tpu.memory_space<any>>, %arg14: memref<1x256xf32, #tpu.memory_space<vmem>>, %arg15: memref<1x256xf32, #tpu.memory_space<vmem>>, %arg16: memref<1x256xf32, #tpu.memory_space<vmem>>, %arg17: memref<256x896xbf16, #tpu.memory_space<any>>, %arg18: memref<1x896xf32, #tpu.memory_space<vmem>>, %arg19: memref<16x896xf32, #tpu.memory_space<vmem>>, %arg20: memref<128x256xbf16, #tpu.memory_space<vmem>>, %arg21: memref<256x896xbf16, #tpu.memory_space<vmem>>, %arg22: memref<2x!tpu.dma_semaphore, #tpu.memory_space<semaphore_mem>>) attributes {dimension_semantics = [], scalar_prefetch = 0 : i64, scratch_operands = 3 : i64, tpu.core_type = #tpu.core_type<tc>} {
    %c0_i32 = arith.constant 0 : i32
    %0 = tpu.memref_slice %arg22[%c0_i32] : memref<2x!tpu.dma_semaphore, #tpu.memory_space<semaphore_mem>> -> memref<1x!tpu.dma_semaphore, #tpu.memory_space<semaphore_mem>>
    %1 = tpu.memref_squeeze %0 : memref<1x!tpu.dma_semaphore, #tpu.memory_space<semaphore_mem>> -> memref<!tpu.dma_semaphore, #tpu.memory_space<semaphore_mem>>
    tpu.enqueue_dma source(%arg13 : memref<128x256xbf16, #tpu.memory_space<any>>) target(%arg20 : memref<128x256xbf16, #tpu.memory_space<vmem>>) target_semaphore(%1 : memref<!tpu.dma_semaphore, #tpu.memory_space<semaphore_mem>>)
    %c1_i32 = arith.constant 1 : i32
    %2 = tpu.memref_slice %arg22[%c1_i32] : memref<2x!tpu.dma_semaphore, #tpu.memory_space<semaphore_mem>> -> memref<1x!tpu.dma_semaphore, #tpu.memory_space<semaphore_mem>>
    %3 = tpu.memref_squeeze %2 : memref<1x!tpu.dma_semaphore, #tpu.memory_space<semaphore_mem>> -> memref<!tpu.dma_semaphore, #tpu.memory_space<semaphore_mem>>
    tpu.enqueue_dma source(%arg17 : memref<256x896xbf16, #tpu.memory_space<any>>) target(%arg21 : memref<256x896xbf16, #tpu.memory_space<vmem>>) target_semaphore(%3 : memref<!tpu.dma_semaphore, #tpu.memory_space<semaphore_mem>>)
    %c0 = arith.constant 0 : index
    %c0_0 = arith.constant 0 : index
    %4 = vector.load %arg0[%c0, %c0_0] : memref<16x16xf32, #tpu.memory_space<vmem>>, vector<16x16xf32>
    %c0_1 = arith.constant 0 : index
    %c0_2 = arith.constant 0 : index
    %5 = vector.load %arg1[%c0_1, %c0_2] : memref<16x32xbf16, #tpu.memory_space<vmem>>, vector<16x32xbf16>
    %6 = arith.truncf %4 : vector<16x16xf32> to vector<16x16xbf16>
    %cst = arith.constant dense<0.000000e+00> : vector<16x32xf32>
    %7 = tpu.matmul %6, %5, %cst {dimension_numbers = #tpu.dot_dimension_numbers<[1], [0], [0], [1], [0, 0, 1, 1], [], []>} : vector<16x16xbf16>, vector<16x32xbf16>, vector<16x32xf32> -> vector<16x32xf32>
    %c0_3 = arith.constant 0 : index
    %c0_4 = arith.constant 0 : index
    %8 = vector.load %arg2[%c0_3, %c0_4] : memref<1x32xf32, #tpu.memory_space<vmem>>, vector<1x32xf32>
    %9 = vector.broadcast %8 : vector<1x32xf32> to vector<16x32xf32>
    %10 = arith.addf %7, %9 : vector<16x32xf32>
    %cst_5 = arith.constant dense<0.000000e+00> : vector<32xf32>
    %11 = vector.multi_reduction <add>, %10, %cst_5 [0] : vector<16x32xf32> to vector<32xf32>
    %12 = vector.shape_cast %11 : vector<32xf32> to vector<1x32xf32>
    %cst_6 = arith.constant 6.250000e-02 : f32
    %13 = vector.broadcast %cst_6 : f32 to vector<1x32xf32>
    %14 = arith.mulf %12, %13 : vector<1x32xf32>
    %15 = arith.mulf %10, %10 : vector<16x32xf32>
    %cst_7 = arith.constant dense<0.000000e+00> : vector<32xf32>
    %16 = vector.multi_reduction <add>, %15, %cst_7 [0] : vector<16x32xf32> to vector<32xf32>
    %17 = vector.shape_cast %16 : vector<32xf32> to vector<1x32xf32>
    %cst_8 = arith.constant 6.250000e-02 : f32
    %18 = vector.broadcast %cst_8 : f32 to vector<1x32xf32>
    %19 = arith.mulf %17, %18 : vector<1x32xf32>
    %20 = arith.mulf %14, %14 : vector<1x32xf32>
    %21 = arith.subf %19, %20 : vector<1x32xf32>
    %22 = vector.broadcast %14 : vector<1x32xf32> to vector<16x32xf32>
    %23 = arith.subf %10, %22 : vector<16x32xf32>
    %cst_9 = arith.constant 9.99999974E-6 : f32
    %24 = vector.broadcast %cst_9 : f32 to vector<1x32xf32>
    %25 = arith.addf %21, %24 : vector<1x32xf32>
    %26 = math.rsqrt %25 : vector<1x32xf32>
    %27 = vector.broadcast %26 : vector<1x32xf32> to vector<16x32xf32>
    %28 = arith.mulf %23, %27 : vector<16x32xf32>
    %c0_10 = arith.constant 0 : index
    %c0_11 = arith.constant 0 : index
    %29 = vector.load %arg3[%c0_10, %c0_11] : memref<1x32xf32, #tpu.memory_space<vmem>>, vector<1x32xf32>
    %30 = vector.broadcast %29 : vector<1x32xf32> to vector<16x32xf32>
    %31 = arith.mulf %28, %30 : vector<16x32xf32>
    %c0_12 = arith.constant 0 : index
    %c0_13 = arith.constant 0 : index
    %32 = vector.load %arg4[%c0_12, %c0_13] : memref<1x32xf32, #tpu.memory_space<vmem>>, vector<1x32xf32>
    %33 = vector.broadcast %32 : vector<1x32xf32> to vector<16x32xf32>
    %34 = arith.addf %31, %33 : vector<16x32xf32>
    %cst_14 = arith.constant 0.000000e+00 : f32
    %35 = vector.broadcast %cst_14 : f32 to vector<16x32xf32>
    %36 = arith.maximumf %34, %35 : vector<16x32xf32>
    %c0_15 = arith.constant 0 : index
    %c0_16 = arith.constant 0 : index
    %37 = vector.load %arg5[%c0_15, %c0_16] : memref<32x64xbf16, #tpu.memory_space<vmem>>, vector<32x64xbf16>
    %38 = arith.truncf %36 : vector<16x32xf32> to vector<16x32xbf16>
    %cst_17 = arith.constant dense<0.000000e+00> : vector<16x64xf32>
    %39 = tpu.matmul %38, %37, %cst_17 {dimension_numbers = #tpu.dot_dimension_numbers<[1], [0], [0], [1], [0, 0, 1, 1], [], []>} : vector<16x32xbf16>, vector<32x64xbf16>, vector<16x64xf32> -> vector<16x64xf32>
    %c0_18 = arith.constant 0 : index
    %c0_19 = arith.constant 0 : index
    %40 = vector.load %arg6[%c0_18, %c0_19] : memref<1x64xf32, #tpu.memory_space<vmem>>, vector<1x64xf32>
    %41 = vector.broadcast %40 : vector<1x64xf32> to vector<16x64xf32>
    %42 = arith.addf %39, %41 : vector<16x64xf32>
    %cst_20 = arith.constant dense<0.000000e+00> : vector<64xf32>
    %43 = vector.multi_reduction <add>, %42, %cst_20 [0] : vector<16x64xf32> to vector<64xf32>
    %44 = vector.shape_cast %43 : vector<64xf32> to vector<1x64xf32>
    %cst_21 = arith.constant 6.250000e-02 : f32
    %45 = vector.broadcast %cst_21 : f32 to vector<1x64xf32>
    %46 = arith.mulf %44, %45 : vector<1x64xf32>
    %47 = arith.mulf %42, %42 : vector<16x64xf32>
    %cst_22 = arith.constant dense<0.000000e+00> : vector<64xf32>
    %48 = vector.multi_reduction <add>, %47, %cst_22 [0] : vector<16x64xf32> to vector<64xf32>
    %49 = vector.shape_cast %48 : vector<64xf32> to vector<1x64xf32>
    %cst_23 = arith.constant 6.250000e-02 : f32
    %50 = vector.broadcast %cst_23 : f32 to vector<1x64xf32>
    %51 = arith.mulf %49, %50 : vector<1x64xf32>
    %52 = arith.mulf %46, %46 : vector<1x64xf32>
    %53 = arith.subf %51, %52 : vector<1x64xf32>
    %54 = vector.broadcast %46 : vector<1x64xf32> to vector<16x64xf32>
    %55 = arith.subf %42, %54 : vector<16x64xf32>
    %cst_24 = arith.constant 9.99999974E-6 : f32
    %56 = vector.broadcast %cst_24 : f32 to vector<1x64xf32>
    %57 = arith.addf %53, %56 : vector<1x64xf32>
    %58 = math.rsqrt %57 : vector<1x64xf32>
    %59 = vector.broadcast %58 : vector<1x64xf32> to vector<16x64xf32>
    %60 = arith.mulf %55, %59 : vector<16x64xf32>
    %c0_25 = arith.constant 0 : index
    %c0_26 = arith.constant 0 : index
    %61 = vector.load %arg7[%c0_25, %c0_26] : memref<1x64xf32, #tpu.memory_space<vmem>>, vector<1x64xf32>
    %62 = vector.broadcast %61 : vector<1x64xf32> to vector<16x64xf32>
    %63 = arith.mulf %60, %62 : vector<16x64xf32>
    %c0_27 = arith.constant 0 : index
    %c0_28 = arith.constant 0 : index
    %64 = vector.load %arg8[%c0_27, %c0_28] : memref<1x64xf32, #tpu.memory_space<vmem>>, vector<1x64xf32>
    %65 = vector.broadcast %64 : vector<1x64xf32> to vector<16x64xf32>
    %66 = arith.addf %63, %65 : vector<16x64xf32>
    %cst_29 = arith.constant 0.000000e+00 : f32
    %67 = vector.broadcast %cst_29 : f32 to vector<16x64xf32>
    %68 = arith.maximumf %66, %67 : vector<16x64xf32>
    %c0_30 = arith.constant 0 : index
    %c0_31 = arith.constant 0 : index
    %69 = vector.load %arg9[%c0_30, %c0_31] : memref<64x128xbf16, #tpu.memory_space<vmem>>, vector<64x128xbf16>
    %70 = arith.truncf %68 : vector<16x64xf32> to vector<16x64xbf16>
    %cst_32 = arith.constant dense<0.000000e+00> : vector<16x128xf32>
    %71 = tpu.matmul %70, %69, %cst_32 {dimension_numbers = #tpu.dot_dimension_numbers<[1], [0], [0], [1], [0, 0, 1, 1], [], []>} : vector<16x64xbf16>, vector<64x128xbf16>, vector<16x128xf32> -> vector<16x128xf32>
    %c0_33 = arith.constant 0 : index
    %c0_34 = arith.constant 0 : index
    %72 = vector.load %arg10[%c0_33, %c0_34] : memref<1x128xf32, #tpu.memory_space<vmem>>, vector<1x128xf32>
    %73 = vector.broadcast %72 : vector<1x128xf32> to vector<16x128xf32>
    %74 = arith.addf %71, %73 : vector<16x128xf32>
    %cst_35 = arith.constant dense<0.000000e+00> : vector<128xf32>
    %75 = vector.multi_reduction <add>, %74, %cst_35 [0] : vector<16x128xf32> to vector<128xf32>
    %76 = vector.shape_cast %75 : vector<128xf32> to vector<1x128xf32>
    %cst_36 = arith.constant 6.250000e-02 : f32
    %77 = vector.broadcast %cst_36 : f32 to vector<1x128xf32>
    %78 = arith.mulf %76, %77 : vector<1x128xf32>
    %79 = arith.mulf %74, %74 : vector<16x128xf32>
    %cst_37 = arith.constant dense<0.000000e+00> : vector<128xf32>
    %80 = vector.multi_reduction <add>, %79, %cst_37 [0] : vector<16x128xf32> to vector<128xf32>
    %81 = vector.shape_cast %80 : vector<128xf32> to vector<1x128xf32>
    %cst_38 = arith.constant 6.250000e-02 : f32
    %82 = vector.broadcast %cst_38 : f32 to vector<1x128xf32>
    %83 = arith.mulf %81, %82 : vector<1x128xf32>
    %84 = arith.mulf %78, %78 : vector<1x128xf32>
    %85 = arith.subf %83, %84 : vector<1x128xf32>
    %86 = vector.broadcast %78 : vector<1x128xf32> to vector<16x128xf32>
    %87 = arith.subf %74, %86 : vector<16x128xf32>
    %cst_39 = arith.constant 9.99999974E-6 : f32
    %88 = vector.broadcast %cst_39 : f32 to vector<1x128xf32>
    %89 = arith.addf %85, %88 : vector<1x128xf32>
    %90 = math.rsqrt %89 : vector<1x128xf32>
    %91 = vector.broadcast %90 : vector<1x128xf32> to vector<16x128xf32>
    %92 = arith.mulf %87, %91 : vector<16x128xf32>
    %c0_40 = arith.constant 0 : index
    %c0_41 = arith.constant 0 : index
    %93 = vector.load %arg11[%c0_40, %c0_41] : memref<1x128xf32, #tpu.memory_space<vmem>>, vector<1x128xf32>
    %94 = vector.broadcast %93 : vector<1x128xf32> to vector<16x128xf32>
    %95 = arith.mulf %92, %94 : vector<16x128xf32>
    %c0_42 = arith.constant 0 : index
    %c0_43 = arith.constant 0 : index
    %96 = vector.load %arg12[%c0_42, %c0_43] : memref<1x128xf32, #tpu.memory_space<vmem>>, vector<1x128xf32>
    %97 = vector.broadcast %96 : vector<1x128xf32> to vector<16x128xf32>
    %98 = arith.addf %95, %97 : vector<16x128xf32>
    %cst_44 = arith.constant 0.000000e+00 : f32
    %99 = vector.broadcast %cst_44 : f32 to vector<16x128xf32>
    %100 = arith.maximumf %98, %99 : vector<16x128xf32>
    %c0_i32_45 = arith.constant 0 : i32
    %101 = tpu.memref_slice %arg22[%c0_i32_45] : memref<2x!tpu.dma_semaphore, #tpu.memory_space<semaphore_mem>> -> memref<1x!tpu.dma_semaphore, #tpu.memory_space<semaphore_mem>>
    %102 = tpu.memref_squeeze %101 : memref<1x!tpu.dma_semaphore, #tpu.memory_space<semaphore_mem>> -> memref<!tpu.dma_semaphore, #tpu.memory_space<semaphore_mem>>
    tpu.wait_dma2 semaphore(%102 : memref<!tpu.dma_semaphore, #tpu.memory_space<semaphore_mem>>) src(%arg13 : memref<128x256xbf16, #tpu.memory_space<any>>) dst(%arg20 : memref<128x256xbf16, #tpu.memory_space<vmem>>)
    %c0_46 = arith.constant 0 : index
    %c0_47 = arith.constant 0 : index
    %103 = vector.load %arg20[%c0_46, %c0_47] : memref<128x256xbf16, #tpu.memory_space<vmem>>, vector<128x256xbf16>
    %104 = arith.truncf %100 : vector<16x128xf32> to vector<16x128xbf16>
    %cst_48 = arith.constant dense<0.000000e+00> : vector<16x256xf32>
    %105 = tpu.matmul %104, %103, %cst_48 {dimension_numbers = #tpu.dot_dimension_numbers<[1], [0], [0], [1], [0, 0, 1, 1], [], []>} : vector<16x128xbf16>, vector<128x256xbf16>, vector<16x256xf32> -> vector<16x256xf32>
    %c0_49 = arith.constant 0 : index
    %c0_50 = arith.constant 0 : index
    %106 = vector.load %arg14[%c0_49, %c0_50] : memref<1x256xf32, #tpu.memory_space<vmem>>, vector<1x256xf32>
    %107 = vector.broadcast %106 : vector<1x256xf32> to vector<16x256xf32>
    %108 = arith.addf %105, %107 : vector<16x256xf32>
    %cst_51 = arith.constant dense<0.000000e+00> : vector<256xf32>
    %109 = vector.multi_reduction <add>, %108, %cst_51 [0] : vector<16x256xf32> to vector<256xf32>
    %110 = vector.shape_cast %109 : vector<256xf32> to vector<1x256xf32>
    %cst_52 = arith.constant 6.250000e-02 : f32
    %111 = vector.broadcast %cst_52 : f32 to vector<1x256xf32>
    %112 = arith.mulf %110, %111 : vector<1x256xf32>
    %113 = arith.mulf %108, %108 : vector<16x256xf32>
    %cst_53 = arith.constant dense<0.000000e+00> : vector<256xf32>
    %114 = vector.multi_reduction <add>, %113, %cst_53 [0] : vector<16x256xf32> to vector<256xf32>
    %115 = vector.shape_cast %114 : vector<256xf32> to vector<1x256xf32>
    %cst_54 = arith.constant 6.250000e-02 : f32
    %116 = vector.broadcast %cst_54 : f32 to vector<1x256xf32>
    %117 = arith.mulf %115, %116 : vector<1x256xf32>
    %118 = arith.mulf %112, %112 : vector<1x256xf32>
    %119 = arith.subf %117, %118 : vector<1x256xf32>
    %120 = vector.broadcast %112 : vector<1x256xf32> to vector<16x256xf32>
    %121 = arith.subf %108, %120 : vector<16x256xf32>
    %cst_55 = arith.constant 9.99999974E-6 : f32
    %122 = vector.broadcast %cst_55 : f32 to vector<1x256xf32>
    %123 = arith.addf %119, %122 : vector<1x256xf32>
    %124 = math.rsqrt %123 : vector<1x256xf32>
    %125 = vector.broadcast %124 : vector<1x256xf32> to vector<16x256xf32>
    %126 = arith.mulf %121, %125 : vector<16x256xf32>
    %c0_56 = arith.constant 0 : index
    %c0_57 = arith.constant 0 : index
    %127 = vector.load %arg15[%c0_56, %c0_57] : memref<1x256xf32, #tpu.memory_space<vmem>>, vector<1x256xf32>
    %128 = vector.broadcast %127 : vector<1x256xf32> to vector<16x256xf32>
    %129 = arith.mulf %126, %128 : vector<16x256xf32>
    %c0_58 = arith.constant 0 : index
    %c0_59 = arith.constant 0 : index
    %130 = vector.load %arg16[%c0_58, %c0_59] : memref<1x256xf32, #tpu.memory_space<vmem>>, vector<1x256xf32>
    %131 = vector.broadcast %130 : vector<1x256xf32> to vector<16x256xf32>
    %132 = arith.addf %129, %131 : vector<16x256xf32>
    %cst_60 = arith.constant 0.000000e+00 : f32
    %133 = vector.broadcast %cst_60 : f32 to vector<16x256xf32>
    %134 = arith.maximumf %132, %133 : vector<16x256xf32>
    %c1_i32_61 = arith.constant 1 : i32
    %135 = tpu.memref_slice %arg22[%c1_i32_61] : memref<2x!tpu.dma_semaphore, #tpu.memory_space<semaphore_mem>> -> memref<1x!tpu.dma_semaphore, #tpu.memory_space<semaphore_mem>>
    %136 = tpu.memref_squeeze %135 : memref<1x!tpu.dma_semaphore, #tpu.memory_space<semaphore_mem>> -> memref<!tpu.dma_semaphore, #tpu.memory_space<semaphore_mem>>
    tpu.wait_dma2 semaphore(%136 : memref<!tpu.dma_semaphore, #tpu.memory_space<semaphore_mem>>) src(%arg17 : memref<256x896xbf16, #tpu.memory_space<any>>) dst(%arg21 : memref<256x896xbf16, #tpu.memory_space<vmem>>)
    %137 = arith.truncf %134 : vector<16x256xf32> to vector<16x256xbf16>
    %c0_62 = arith.constant 0 : index
    %c0_63 = arith.constant 0 : index
    %138 = vector.load %arg21[%c0_62, %c0_63] : memref<256x896xbf16, #tpu.memory_space<vmem>>, vector<256x896xbf16>
    %cst_64 = arith.constant dense<0.000000e+00> : vector<16x896xf32>
    %139 = tpu.matmul %137, %138, %cst_64 {dimension_numbers = #tpu.dot_dimension_numbers<[1], [0], [0], [1], [0, 0, 1, 1], [], []>} : vector<16x256xbf16>, vector<256x896xbf16>, vector<16x896xf32> -> vector<16x896xf32>
    %c0_65 = arith.constant 0 : index
    %c0_66 = arith.constant 0 : index
    %140 = vector.load %arg18[%c0_65, %c0_66] : memref<1x896xf32, #tpu.memory_space<vmem>>, vector<1x896xf32>
    %141 = vector.broadcast %140 : vector<1x896xf32> to vector<16x896xf32>
    %142 = arith.addf %139, %141 : vector<16x896xf32>
    %cst_67 = arith.constant 0.000000e+00 : f32
    %143 = vector.broadcast %cst_67 : f32 to vector<16x896xf32>
    %144 = arith.subf %143, %142 : vector<16x896xf32>
    %145 = math.exp %144 : vector<16x896xf32>
    %cst_68 = arith.constant 1.000000e+00 : f32
    %146 = vector.broadcast %cst_68 : f32 to vector<16x896xf32>
    %147 = arith.addf %146, %145 : vector<16x896xf32>
    %148 = tpu.reciprocal %147 {approx = true} : vector<16x896xf32> -> vector<16x896xf32>
    %c0_69 = arith.constant 0 : index
    %c0_70 = arith.constant 0 : index
    %149 = vector.load %arg19[%c0_69, %c0_70] : memref<16x896xf32, #tpu.memory_space<vmem>>, vector<16x896xf32>
    tpu.vector_store %arg19[%c0_69, %c0_70], %148 {strides = array<i32>} : memref<16x896xf32, #tpu.memory_space<vmem>>, vector<16x896xf32>,
    return
  }
}

</mosaic_0001>

<bundles_post_ra>
// kernel: tpu_custom_call.1
= control target key start
LH: loop header
LB: loop body
LE: loop exit
PB: predicated region body
PF: predicated region fallthrough
CT: control target
= control target key end

     0   :  { %s2846_s0 = inlined_call_operand.hbm [shape: f32[16,16], index: 0, kind: input, shape index: {}]   ;;  %s2847_s1 = inlined_call_operand.hbm [shape: bf16[16,32], index: 1, kind: input, shape index: {}]   ;;  %s2848_s2 = inlined_call_operand.vmem [shape: f32[1,32], index: 2, kind: input, shape index: {}]   ;;  %s2849_s3 = inlined_call_operand.hbm [shape: f32[1,32], index: 3, kind: input, shape index: {}]   ;;  %s2850_s4 = inlined_call_operand.hbm [shape: f32[1,32], index: 4, kind: input, shape index: {}]   ;;  %s2851_s5 = inlined_call_operand.hbm [shape: bf16[32,64], index: 5, kind: input, shape index: {}]   ;;  %s2852_s6 = inlined_call_operand.hbm [shape: f32[1,64], index: 6, kind: input, shape index: {}]   ;;  %s2853_s7 = inlined_call_operand.hbm [shape: f32[1,64], index: 7, kind: input, shape index: {}]   ;;  %s2854_s8 = inlined_call_operand.hbm [shape: f32[1,64], index: 8, kind: input, shape index: {}]   ;;  %s2855_s9 = inlined_call_operand.hbm [shape: bf16[64,128], index: 9, kind: input, shape index: {}]   ;;  %s2856_s10 = inlined_call_operand.vmem [shape: f32[1,128], index: 10, kind: input, shape index: {}]   ;;  %s2857_s11 = inlined_call_operand.vmem [shape: f32[1,128], index: 11, kind: input, shape index: {}]   ;;  %s2858_s12 = inlined_call_operand.vmem [shape: f32[1,128], index: 12, kind: input, shape index: {}]   ;;  %s2859_s13 = inlined_call_operand.hbm [shape: bf16[128,256], index: 13, kind: input, shape index: {}]   ;;  %s2860_s14 = inlined_call_operand.vmem [shape: f32[1,256], index: 14, kind: input, shape index: {}]   ;;  %s2861_s15 = inlined_call_operand.vmem [shape: f32[1,256], index: 15, kind: input, shape index: {}]   ;;  %s2862_s16 = inlined_call_operand.vmem [shape: f32[1,256], index: 16, kind: input, shape index: {}]   ;;  %s2863_s17 = inlined_call_operand.hbm [shape: bf16[256,896], index: 17, kind: input, shape index: {}]   ;;  %s2864_s18 = inlined_call_operand.vmem [shape: f32[1,896], index: 18, kind: input, shape index: {}]   ;;  %s2865_s19 = inlined_call_operand.hbm [shape: f32[16,896], index: 19, kind: output, shape index: {}]  }
   0x1   :  { %2866 = sst [smem:[#allocation35_spill]] %s2846_s0 }
   0x2   :  { %2867 = sst [smem:[#allocation36_spill]] %s2847_s1 }
   0x3   :  { %2868 = sst [smem:[#allocation37_spill]] %s2848_s2 }
   0x4   :  { %2869 = sst [smem:[#allocation38_spill]] %s2849_s3 }
   0x5   :  { %24 = vsyncpa [#allocation6], 0 }
   0x6   :  { %25 = vsyncpa [#allocation9], 0 }
   0x7   :  { %26 = vsyncpa [#allocation12], 0 }
   0x8   :  { %27 = vsyncpa [#allocation15], 0 }
   0x9   :  { %28 = vsyncpa [#allocation18], 0 }
   0xa   :  { %29 = vsyncpa [#allocation7], 0  ;;  %s2578_s0 = smov [#allocation8]  }
   0xb   :  { %s47_s30 = sshll.u32 %s2578_s0, 4  ;;  %s48_s30 = int_to_ptr.vmem [resolvable:$true] %s47_s30 }
   0xc   :  { %s2330_s20 = scalar_lea.vmem %s48_s30, 128  ;;  %p2335_p1 = scmp.lt.s32.totalorder %s48_s30, %s48_s30 }
   0xd   :  { %p2331_p0 = scmp.ne.s32.totalorder %s48_s30, %s2330_s20  ;;  %p2336_p2 = scmp.lt.s32.totalorder %s2330_s20, %s2330_s20 }
   0xf   :  { %p2337_p3 = por %p2336_p2, %p2335_p1 }
  0x11   :  { %p2338_p4 = pnand %p2337_p3, %p2331_p0 }
  0x13   :  { %2341 = shalt.err (!%p2338_p4)
}
  0x14   :  { %s2579_s21 = smov 64   ;;  %s2580_s1 = smov 4  }
  0x15   :  { %s2870_s23 = sld [smem:[#allocation36_spill]]  ;;  %s2581_s24 = smov [#allocation11]  }
  0x16   :  { %s72_s25 = sshll.u32 %s2581_s24, 4  ;;  %s2582_s3 = smov [#allocation14]   ;;  %s73_s25 = int_to_ptr.vmem [resolvable:$true] %s72_s25 }
  0x17   :  { %s94_s26 = sshll.u32 %s2582_s3, 4  ;;  %s2350_s27 = scalar_lea.vmem %s73_s25, 16  ;;  %s95_s26 = int_to_ptr.vmem [resolvable:$true] %s94_s26 }
  0x18   :  { %p2351_p5 = scmp.ne.s32.totalorder %s73_s25, %s2350_s27  ;;  %s2354_s28 = scalar_lea.vmem %s73_s25, 32 }
  0x19   :  { %p2355_p6 = scmp.lt.s32.totalorder %s73_s25, %s73_s25  ;;  %p2356_p7 = scmp.lt.s32.totalorder %s2354_s28, %s2350_s27 }
  0x1b   :  { %53 = dma.hbm_to_vmem [thread:$0]  %s2870_s23, 128, %s48_s30, [#allocation9], %s2579_s21, %s2579_s21, %s2580_s1  }
  0x1c   :  { %p2357_p8 = por %p2356_p7, %p2355_p6 }
  0x1e   :  { %p2358_p9 = pnand %p2357_p8, %p2351_p5 }
  0x20   :  { %2361 = shalt.err (!%p2358_p9)
}
  0x21   :  { %75 = dma.hbm_to_vmem [thread:$0]  %s2850_s4, 16, %s73_s25, [#allocation12]  }
  0x22   :  { %s2370_s20 = scalar_lea.vmem %s95_s26, 16  ;;  %s2374_s30 = scalar_lea.vmem %s95_s26, 32 }
  0x23   :  { %p2371_p10 = scmp.ne.s32.totalorder %s95_s26, %s2370_s20  ;;  %p2375_p11 = scmp.lt.s32.totalorder %s95_s26, %s95_s26 }
  0x24   :  { %p2376_p12 = scmp.lt.s32.totalorder %s2374_s30, %s2370_s20 }
  0x26   :  { %p2377_p13 = por %p2376_p12, %p2375_p11 }
  0x28   :  { %p2378_p0 = pnand %p2377_p13, %p2371_p10 }
  0x2a   :  { %2381 = shalt.err (!%p2378_p0)
}
  0x2b   :  { %97 = dma.hbm_to_vmem [thread:$0]  %s2852_s6, 16, %s95_s26, [#allocation15]  }
  0x2c   :  { %s2583_s23 = smov [#allocation17]   ;;  %s2584_s3 = smov [#allocation5]  }
  0x2d   :  { %s114_s24 = sshll.u32 %s2583_s23, 4  ;;  %s35_s27 = sshll.u32 %s2584_s3, 4  ;;  %s115_s24 = int_to_ptr.vmem [resolvable:$true] %s114_s24  ;;  %s36_s27 = int_to_ptr.vmem [resolvable:$true] %s35_s27 }
  0x2e   :  { %s2390_s28 = scalar_lea.vmem %s115_s24, 16  ;;  %s2394_s4 = scalar_lea.vmem %s115_s24, 32 }
  0x2f   :  { %p2391_p1 = scmp.ne.s32.totalorder %s115_s24, %s2390_s28  ;;  %p2395_p2 = scmp.lt.s32.totalorder %s115_s24, %s115_s24 }
  0x30   :  { %p2396_p3 = scmp.lt.s32.totalorder %s2394_s4, %s2390_s28 }
  0x32   :  { %p2397_p4 = por %p2396_p3, %p2395_p2 }
  0x34   :  { %p2398_p5 = pnand %p2397_p4, %p2391_p1 }
  0x36   :  { %2401 = shalt.err (!%p2398_p5)
}
  0x37   :  { %117 = dma.hbm_to_vmem [thread:$0]  %s2854_s8, 16, %s115_s24, [#allocation18]  }
  0x38   :  { %s2410_s0 = scalar_lea.vmem %s36_s27, 256  ;;  %p2415_p7 = scmp.lt.s32.totalorder %s36_s27, %s36_s27 }
  0x39   :  { %p2411_p6 = scmp.ne.s32.totalorder %s36_s27, %s2410_s0  ;;  %p2416_p8 = scmp.lt.s32.totalorder %s2410_s0, %s2410_s0 }
  0x3b   :  { %p2417_p9 = por %p2416_p8, %p2415_p7 }
  0x3d   :  { %p2418_p10 = pnand %p2417_p9, %p2411_p6 }
  0x3f   :  { %2421 = shalt.err (!%p2418_p10)
}
  0x40   :  { %s2585_s6 = smov 128   ;;  %s2586_s26 = smov 8  }
  0x41   :  { %s2871_s22 = sld [smem:[#allocation35_spill]]  ;;  %s2587_s2 = smov [#allocation10]  }
  0x42   :  { %s62_s23 = sshll.u32 %s2587_s2, 4  ;;  %s2588_s3 = smov [#allocation13]   ;;  %s63_s23 = int_to_ptr.vmem [resolvable:$true] %s62_s23 }
  0x43   :  { %s81_s28 = sshll.u32 %s2588_s3, 4  ;;  %s2430_s8 = scalar_lea.vmem %s63_s23, 16  ;;  %s82_s28 = int_to_ptr.vmem [resolvable:$true] %s81_s28 }
  0x44   :  { %p2431_p11 = scmp.ne.s32.totalorder %s63_s23, %s2430_s8  ;;  %s2434_s24 = scalar_lea.vmem %s63_s23, 32 }
  0x45   :  { %p2435_p12 = scmp.lt.s32.totalorder %s63_s23, %s63_s23  ;;  %p2436_p13 = scmp.lt.s32.totalorder %s2434_s24, %s2430_s8 }
  0x47   :  { %41 = dma.hbm_to_vmem [thread:$0]  %s2871_s22, 256, %s36_s27, [#allocation6], %s2585_s6, %s2585_s6, %s2586_s26  }
  0x48   :  { %p2437_p0 = por %p2436_p13, %p2435_p12 }
  0x4a   :  { %p2438_p1 = pnand %p2437_p0, %p2431_p11 }
  0x4c   :  { %2441 = shalt.err (!%p2438_p1)
}
  0x4d   :  { %s2872_s29 = sld [smem:[#allocation38_spill]]  ;;  %s2450_s0 = scalar_lea.vmem %s82_s28, 256 }
  0x4e   :  { %p2451_p2 = scmp.ne.s32.totalorder %s82_s28, %s2450_s0  ;;  %p2455_p3 = scmp.lt.s32.totalorder %s82_s28, %s82_s28 }
  0x4f   :  { %p2456_p4 = scmp.lt.s32.totalorder %s2450_s0, %s2450_s0 }
  0x51   :  { %p2457_p5 = por %p2456_p4, %p2455_p3 }
  0x53   :  { %65 = dma.hbm_to_vmem [thread:$0]  %s2872_s29, 16, %s63_s23, [#allocation9]  }
  0x54   :  { %p2458_p6 = pnand %p2457_p5, %p2451_p2 }
  0x56   :  { %2461 = shalt.err (!%p2458_p6)
}
  0x57   :  { %87 = dma.hbm_to_vmem [thread:$0]  %s2851_s5, 256, %s82_s28, [#allocation12], %s2579_s21, %s2579_s21, %s2580_s1  }
  0x58   :  { %s2589_s26 = smov [#allocation16]   ;;  %s2590_s30 = smov [#allocation19]  }
  0x59   :  { %s104_s20 = sshll.u32 %s2589_s26, 4  ;;  %s123_s22 = sshll.u32 %s2590_s30, 4  ;;  %s105_s20 = int_to_ptr.vmem [resolvable:$true] %s104_s20  ;;  %s124_s22 = int_to_ptr.vmem [resolvable:$true] %s123_s22 }
  0x5a   :  { %s2470_s2 = scalar_lea.vmem %s105_s20, 16  ;;  %s2474_s23 = scalar_lea.vmem %s105_s20, 32 }
  0x5b   :  { %p2471_p7 = scmp.ne.s32.totalorder %s105_s20, %s2470_s2  ;;  %p2475_p8 = scmp.lt.s32.totalorder %s105_s20, %s105_s20 }
  0x5c   :  { %p2476_p9 = scmp.lt.s32.totalorder %s2474_s23, %s2470_s2 }
  0x5e   :  { %p2477_p10 = por %p2476_p9, %p2475_p8 }
  0x60   :  { %p2478_p11 = pnand %p2477_p10, %p2471_p7 }
  0x62   :  { %2481 = shalt.err (!%p2478_p11)
}
  0x63   :  { %107 = dma.hbm_to_vmem [thread:$0]  %s2853_s7, 16, %s105_s20, [#allocation15]  }
  0x64   :  { %s2490_s24 = scalar_lea.vmem %s124_s22, 512  ;;  %p2495_p13 = scmp.lt.s32.totalorder %s124_s22, %s124_s22 }
  0x65   :  { %p2491_p12 = scmp.ne.s32.totalorder %s124_s22, %s2490_s24  ;;  %p2496_p0 = scmp.lt.s32.totalorder %s2490_s24, %s2490_s24 }
  0x67   :  { %p2497_p1 = por %p2496_p0, %p2495_p13 }
  0x69   :  { %p2498_p2 = pnand %p2497_p1, %p2491_p12 }
  0x6b   :  { %2501 = shalt.err (!%p2498_p2)
}
  0x6c   :  { %129 = dma.hbm_to_vmem [thread:$0]  %s2855_s9, 512, %s124_s22, [#allocation18], %s2579_s21, %s2579_s21, %s2580_s1  }
  0x6d   :  { %2562 = dma.done.wait [#allocation6], 256  }
  0x6e   :  { %2563 = vsyncadd [#allocation6], 4294967040 }
  0x6f   :  { %2564 = dma.done.wait [#allocation9], 144  }
  0x70   :  { %2565 = vsyncadd [#allocation9], 4294967152 }
  0x71   :  { %2566 = dma.done.wait [#allocation12], 272  }
  0x72   :  { %2567 = vsyncadd [#allocation12], 4294967024 }
  0x73   :  { %2568 = dma.done.wait [#allocation15], 32  }
  0x74   :  { %2569 = vsyncadd [#allocation15], 4294967264 }
  0x75   :  { %2570 = dma.done.wait [#allocation18], 528  }
  0x76   :  { %2571 = vsyncadd [#allocation18], 4294966768  ;;  %v2591_v0 = vmov 0.0   ;;  %vm2592_vm0 = vmmov 0   ;;  %v2065_v1 = vld [vmem:[#allocation8] sm:$0xff]   ;;  %v195_v2 = vld [vmem:[#allocation5] sm:$0xff] }
  0x77   :  { %2018 = vmatprep.subr.bf16.mxu1 %v2591_v0  ;;  %2020 = vmatprep.mubr.msk.bf16.mxu1 %vm2592_vm0, %v2591_v0  ;;  %v196_v3 = vld [vmem:[#allocation5 + $0x8] sm:$0xff]  ;;  %vm213_vm1 = vcmask 130048   ;;  %v2067_v6 = vld [vmem:[#allocation13] sm:$0xff]   ;;  %s2873_s21 = sld [smem:[#allocation37_spill]]  ;;  %vm258_vm2 = vcmask 261120   ;;  %v2071_v56 = vld [vmem:[#allocation19] sm:$0xff]  }
  0x78   :  { %2032 = vmatprep.subr.bf16.mxu0 %v2591_v0  ;;  %2040 = vmatprep.mubr.msk.bf16.mxu0 %vm2592_vm0, %v2591_v0  ;;  %v199_v4 = vpack.c.bf16 %v196_v3, %v195_v2  ;;  %v2066_v5 = vld [vmem:[#allocation13 + $0x8] sm:$0xff]   ;;  %v1840_v42 = vld [vmem:[#allocation10] ss:$0 sm:$0xff]  ;;  %v1841_v45 = vld [vmem:[#allocation11] ss:$0 sm:$0xff]  ;;  %vm377_vm3 = vcmask 523264  }
  0x79   :  { %2019 = vmatpush3.bf16.msra.mxu1 %v2065_v1  ;;  %v2068_v53 = vld [vmem:[#allocation19 + $0x18] sm:$0xff]   ;;  %v2069_v54 = vld [vmem:[#allocation19 + $0x10] sm:$0xff]   ;;  %v2070_v55 = vld [vmem:[#allocation19 + $0x8] sm:$0xff]   ;;  %s2593_s1 = smov [#allocation2]   ;;  %s2594_s25 = smov [#allocation3]  }
  0x7a   :  { %2024 = vmatprep.subr.bf16.mxu1 %v2591_v0  ;;  %2033 = vmatpush3.bf16.msra.mxu0 %v2068_v53  ;;  %v1842_v57 = vld [vmem:[#allocation14] ss:$0 sm:$0xff]  ;;  %s179_s4 = sshll.u32 %s2593_s1, 4  ;;  %s191_s29 = sshll.u32 %s2594_s25, 4  ;;  %s180_s4 = int_to_ptr.vmem [resolvable:$true] %s179_s4  ;;  %s192_s29 = int_to_ptr.vmem [resolvable:$true] %s191_s29 }
  0x7b   :  { %2034 = vmatprep.subr.bf16.mxu0 %v2591_v0  ;;  %s2510_s0 = scalar_lea.vmem %s180_s4, 2048  ;;  %p2515_p4 = scmp.lt.s32.totalorder %s180_s4, %s180_s4 }
  0x7c   :  { %2021 = vmatmul.mubr.msk.bf16.vlgmr.msra.gmra.mxu1 %vm213_vm1, %v199_v4  ;;  %p2511_p3 = scmp.ne.s32.totalorder %s180_s4, %s2510_s0  ;;  %p2516_p5 = scmp.lt.s32.totalorder %s2510_s0, %s2510_s0 }
  0x7d   :  { %2028 = vmatprep.mubr.msk.bf16.mxu1 %vm2592_vm0, %v2591_v0  ;;  %2025 = vmatpush3.bf16.msra.mxu1 %v2066_v5  ;;  %v1837_v7 = vld [vmem:[%s2873_s21] ss:$0 sm:$0xff] }
  0x7e   :  { %2026 = vmatprep.subr.bf16.mxu1 %v2591_v0  ;;  %2035 = vmatpush3.bf16.msra.mxu0 %v2069_v54  ;;  %p2517_p6 = por %p2516_p5, %p2515_p4 }
  0x7f   :  { %2036 = vmatprep.subr.bf16.mxu0 %v2591_v0 }
  0x80   :  { %p2518_p7 = pnand %p2517_p6, %p2511_p3 }
  0x81   :  { %2027 = vmatpush3.bf16.msra.mxu1 %v2067_v6 }
  0x82   :  { %2037 = vmatpush3.bf16.msra.mxu0 %v2070_v55 }
  0x83   :  { %2038 = vmatprep.subr.bf16.mxu0 %v2591_v0 }
  0x86   :  { %2039 = vmatpush3.bf16.msra.mxu0 %v2071_v56 }
 0x13c   :  { %v251_v8 = vpop.f32.mrf.mxu1 }
 0x13d   :  { %v252_v9 = vadd.f32 %v1837_v7, %v251_v8 }
 0x13e   :  { %v2022_v10 = vpop.f32.mrf.mxu1 }
 0x13f   :  { %v269_v12 = vmul.f32 %v252_v9, %v252_v9  ;;  %v259_v15 = vsel %vm258_vm2, %v252_v9, 0.0 }
 0x140   :  { %v254_v11 = vpop.f32.mrf.mxu1 }
 0x141   :  { %v255_v13 = vadd.f32 %v1837_v7, %v254_v11  ;;  %v271_v19 = vsel %vm258_vm2, %v269_v12, 0.0 }
 0x142   :  { %v2023_v14 = vpop.f32.mrf.mxu1 }
 0x143   :  { %v260_v16 = vsel %vm258_vm2, %v255_v13, 0.0  ;;  %v270_v17 = vmul.f32 %v255_v13, %v255_v13 }
 0x144   :  { %v261_v18 = vadd.f32 %v260_v16, %v259_v15 }
 0x145   :  { %v272_v20 = vsel %vm258_vm2, %v270_v17, 0.0 }
 0x146   :  { %v262_v21 = vrot.slane %v261_v18, 4  ;;  %v273_v22 = vadd.f32 %v272_v20, %v271_v19 }
 0x148   :  { %v263_v23 = vadd.f32 %v262_v21, %v261_v18  ;;  %v274_v24 = vrot.slane %v273_v22, 4 }
 0x14a   :  { %v264_v25 = vrot.slane %v263_v23, 2  ;;  %v275_v26 = vadd.f32 %v274_v24, %v273_v22 }
 0x14c   :  { %v265_v27 = vadd.f32 %v264_v25, %v263_v23  ;;  %v276_v28 = vrot.slane %v275_v26, 2 }
 0x14e   :  { %v266_v29 = vrot.slane %v265_v27, 1  ;;  %v277_v30 = vadd.f32 %v276_v28, %v275_v26  ;;  %v1846_v28 = vld [vmem:[#allocation16] ss:$0 sm:$0xff] }
 0x150   :  { %v267_v31 = vadd.f32 %v266_v29, %v265_v27  ;;  %v278_v32 = vrot.slane %v277_v30, 1 }
 0x152   :  { %v268_v33 = vmul.f32 0.0625, %v267_v31  ;;  %v279_v34 = vadd.f32 %v278_v32, %v277_v30  ;;  %v1847_v31 = vld [vmem:[#allocation17] ss:$0 sm:$0xff] }
 0x154   :  { %v280_v35 = vmul.f32 0.0625, %v279_v34  ;;  %v281_v36 = vmul.f32 %v268_v33, %v268_v33  ;;  %v283_v39 = vsub.f32 %v252_v9, %v268_v33  ;;  %v284_v40 = vsub.f32 %v255_v13, %v268_v33 }
 0x156   :  { %v282_v37 = vsub.f32 %v280_v35, %v281_v36 }
 0x158   :  { %v285_v38 = vadd.f32 1e-05, %v282_v37 }
 0x15a   :  { %2072 = vrsqrt.f32 %v285_v38 }
 0x167   :  { %v2073_v41 = vpop.eup %2072 }
 0x168   :  { %v287_v43 = vmul.f32 %v2073_v41, %v283_v39  ;;  %v288_v44 = vmul.f32 %v2073_v41, %v284_v40 }
 0x16a   :  { %v296_v46 = vmul.f32 %v1840_v42, %v287_v43  ;;  %v297_v47 = vmul.f32 %v1840_v42, %v288_v44 }
 0x16c   :  { %v305_v48 = vadd.f32 %v1841_v45, %v296_v46  ;;  %v306_v49 = vadd.f32 %v1841_v45, %v297_v47 }
 0x16e   :  { %v307_v50 = vmax.f32 %v305_v48, 0.0  ;;  %v308_v51 = vmax.f32 %v306_v49, 0.0 }
 0x170   :  { %v313_v52 = vpack.c.bf16 %v308_v51, %v307_v50 }
 0x172   :  { %2029 = vmatmul.mubr.msk.bf16.vlgmr.msra.gmra.mxu1 %vm258_vm2, %v313_v52 }
 0x232   :  { %v370_v58 = vpop.f32.mrf.mxu1 }
 0x233   :  { %v371_v59 = vadd.f32 %v1842_v57, %v370_v58 }
 0x234   :  { %v2030_v60 = vpop.f32.mrf.mxu1 }
 0x235   :  { %v388_v62 = vmul.f32 %v371_v59, %v371_v59  ;;  %v378_v2 = vsel %vm377_vm3, %v371_v59, 0.0 }
 0x236   :  { %v373_v61 = vpop.f32.mrf.mxu1 }
 0x237   :  { %v374_v63 = vadd.f32 %v1842_v57, %v373_v61  ;;  %v390_v6 = vsel %vm377_vm3, %v388_v62, 0.0 }
 0x238   :  { %v2031_v1 = vpop.f32.mrf.mxu1 }
 0x239   :  { %v379_v3 = vsel %vm377_vm3, %v374_v63, 0.0  ;;  %v389_v4 = vmul.f32 %v374_v63, %v374_v63 }
 0x23a   :  { %v380_v5 = vadd.f32 %v379_v3, %v378_v2 }
 0x23b   :  { %v391_v0 = vsel %vm377_vm3, %v389_v4, 0.0 }
 0x23c   :  { %v381_v7 = vrot.slane %v380_v5, 4  ;;  %v392_v8 = vadd.f32 %v391_v0, %v390_v6 }
 0x23e   :  { %v382_v9 = vadd.f32 %v381_v7, %v380_v5  ;;  %v393_v10 = vrot.slane %v392_v8, 4 }
 0x240   :  { %v383_v11 = vrot.slane %v382_v9, 2  ;;  %v394_v12 = vadd.f32 %v393_v10, %v392_v8 }
 0x242   :  { %v384_v13 = vadd.f32 %v383_v11, %v382_v9  ;;  %v395_v14 = vrot.slane %v394_v12, 2 }
 0x244   :  { %v385_v15 = vrot.slane %v384_v13, 1  ;;  %v396_v16 = vadd.f32 %v395_v14, %v394_v12 }
 0x246   :  { %v386_v17 = vadd.f32 %v385_v15, %v384_v13  ;;  %v397_v18 = vrot.slane %v396_v16, 1 }
 0x248   :  { %v387_v19 = vmul.f32 0.0625, %v386_v17  ;;  %v398_v20 = vadd.f32 %v397_v18, %v396_v16 }
 0x24a   :  { %v399_v21 = vmul.f32 0.0625, %v398_v20  ;;  %v400_v22 = vmul.f32 %v387_v19, %v387_v19  ;;  %v402_v25 = vsub.f32 %v371_v59, %v387_v19  ;;  %v403_v26 = vsub.f32 %v374_v63, %v387_v19 }
 0x24c   :  { %v401_v23 = vsub.f32 %v399_v21, %v400_v22 }
 0x24e   :  { %v404_v24 = vadd.f32 1e-05, %v401_v23 }
 0x250   :  { %2074 = vrsqrt.f32 %v404_v24 }
 0x25d   :  { %v2075_v27 = vpop.eup %2074 }
 0x25e   :  { %v406_v29 = vmul.f32 %v2075_v27, %v402_v25  ;;  %v407_v30 = vmul.f32 %v2075_v27, %v403_v26 }
 0x260   :  { %v415_v32 = vmul.f32 %v1846_v28, %v406_v29  ;;  %v416_v33 = vmul.f32 %v1846_v28, %v407_v30 }
 0x262   :  { %v424_v34 = vadd.f32 %v1847_v31, %v415_v32  ;;  %v425_v35 = vadd.f32 %v1847_v31, %v416_v33 }
 0x264   :  { %v426_v36 = vmax.f32 %v424_v34, 0.0  ;;  %v427_v37 = vmax.f32 %v425_v35, 0.0 }
 0x266   :  { %v436_v38 = vpack.c.bf16 %v427_v37, %v426_v36 }
 0x268   :  { %2041 = vmatmul.mubr.msk.bf16.vlgmr.msra.gmra.mxu0 %vm377_vm3, %v436_v38 }
 0x269   :  { %2521 = shalt.err (!%p2518_p7)  }
 0x26a   :  { %182 = dma.hbm_to_vmem [thread:$0]  %s2859_s13, 2048, %s180_s4, [#allocation4] }
 0x26b   :  { %s2530_s26 = scalar_lea.vmem %s192_s29, 14336  ;;  %p2535_p9 = scmp.lt.s32.totalorder %s192_s29, %s192_s29 }
 0x26c   :  { %p2531_p8 = scmp.ne.s32.totalorder %s192_s29, %s2530_s26  ;;  %p2536_p10 = scmp.lt.s32.totalorder %s2530_s26, %s2530_s26 }
 0x26e   :  { %p2537_p11 = por %p2536_p10, %p2535_p9 }
 0x270   :  { %p2538_p12 = pnand %p2537_p11, %p2531_p8 }
 0x272   :  { %2541 = shalt.err (!%p2538_p12)  }
 0x273   :  { %194 = dma.hbm_to_vmem [thread:$0]  %s2863_s17, 14336, %s192_s29, [#allocation4 + $0x1]  ;;  %v1848_v39 = vld [vmem:[%s2856_s10] ss:$0 sm:$0xff] }
 0x274   :  { %v1854_v0 = vld [vmem:[%s2857_s11] ss:$0 sm:$0xff] }
 0x275   :  { %v1855_v9 = vld [vmem:[%s2858_s12] ss:$0 sm:$0xff] }
 0x328   :  { %v505_v40 = vpop.f32.mrf.mxu0 }
 0x329   :  { %v506_v42 = vadd.f32 %v1848_v39, %v505_v40 }
 0x32a   :  { %v2042_v41 = vpop.f32.mrf.mxu0 }
 0x32b   :  { %v520_v46 = vmul.f32 %v506_v42, %v506_v42 }
 0x32c   :  { %v508_v43 = vpop.f32.mrf.mxu0 }
 0x32d   :  { %v509_v44 = vadd.f32 %v1848_v39, %v508_v43 }
 0x32e   :  { %v2043_v45 = vpop.f32.mrf.mxu0 }
 0x32f   :  { %v512_v47 = vadd.f32 %v509_v44, %v506_v42  ;;  %v521_v48 = vmul.f32 %v509_v44, %v509_v44 }
 0x331   :  { %v513_v49 = vrot.slane %v512_v47, 4  ;;  %v522_v50 = vadd.f32 %v521_v48, %v520_v46 }
 0x333   :  { %v514_v51 = vadd.f32 %v513_v49, %v512_v47  ;;  %v523_v52 = vrot.slane %v522_v50, 4 }
 0x335   :  { %v515_v53 = vrot.slane %v514_v51, 2  ;;  %v524_v54 = vadd.f32 %v523_v52, %v522_v50 }
 0x337   :  { %v516_v55 = vadd.f32 %v515_v53, %v514_v51  ;;  %v525_v56 = vrot.slane %v524_v54, 2 }
 0x339   :  { %v517_v57 = vrot.slane %v516_v55, 1  ;;  %v526_v58 = vadd.f32 %v525_v56, %v524_v54 }
 0x33b   :  { %v518_v59 = vadd.f32 %v517_v57, %v516_v55  ;;  %v527_v60 = vrot.slane %v526_v58, 1 }
 0x33d   :  { %v519_v61 = vmul.f32 0.0625, %v518_v59  ;;  %v528_v62 = vadd.f32 %v527_v60, %v526_v58 }
 0x33f   :  { %v529_v63 = vmul.f32 0.0625, %v528_v62  ;;  %v530_v1 = vmul.f32 %v519_v61, %v519_v61  ;;  %v532_v4 = vsub.f32 %v506_v42, %v519_v61  ;;  %v533_v5 = vsub.f32 %v509_v44, %v519_v61 }
 0x341   :  { %v531_v2 = vsub.f32 %v529_v63, %v530_v1 }
 0x343   :  { %v534_v3 = vadd.f32 1e-05, %v531_v2 }
 0x345   :  { %2076 = vrsqrt.f32 %v534_v3 }
 0x352   :  { %v2077_v6 = vpop.eup %2076 }
 0x353   :  { %v536_v7 = vmul.f32 %v2077_v6, %v532_v4  ;;  %v537_v8 = vmul.f32 %v2077_v6, %v533_v5 }
 0x355   :  { %v545_v10 = vmul.f32 %v1854_v0, %v536_v7  ;;  %v546_v11 = vmul.f32 %v1854_v0, %v537_v8 }
 0x357   :  { %v554_v12 = vadd.f32 %v1855_v9, %v545_v10  ;;  %v555_v13 = vadd.f32 %v1855_v9, %v546_v11 }
 0x359   :  { %v556_v14 = vmax.f32 %v554_v12, 0.0  ;;  %v557_v15 = vmax.f32 %v555_v13, 0.0 }
 0x35a   :  { %2572 = dma.done.wait [#allocation4], 2048 }
 0x35b   :  { %2573 = vsyncadd [#allocation4], 4294965248  ;;  %v2595_v16 = vmov 0   ;;  %v2078_v17 = vld [vmem:[#allocation2 + $0x74] ss:$8 sps:$4 sm:$0xff]   ;;  %v578_v33 = vpack.c.bf16 %v557_v15, %v556_v14  ;;  %v581_v34 = vlaneseq }
 0x35c   :  { %703 = vmatprep.mubr.bf16.mxu1 %v2595_v16  ;;  %v2080_v18 = vld [vmem:[#allocation2 + $0x70] ss:$8 sps:$4 sm:$0xff]   ;;  %671 = vmatprep.subr.bf16.mxu1 %v2078_v17  ;;  %v2081_v19 = vld [vmem:[#allocation2 + $0x64] ss:$8 sps:$4 sm:$0xff]   ;;  %v2083_v20 = vld [vmem:[#allocation2 + $0x60] ss:$8 sps:$4 sm:$0xff]  }
 0x35d   :  { %672 = vmatpush1.bf16.msra.mxu1 %v2080_v18  ;;  %v2084_v21 = vld [vmem:[#allocation2 + $0x54] ss:$8 sps:$4 sm:$0xff]   ;;  %v2086_v22 = vld [vmem:[#allocation2 + $0x50] ss:$8 sps:$4 sm:$0xff]   ;;  %v2087_v23 = vld [vmem:[#allocation2 + $0x44] ss:$8 sps:$4 sm:$0xff]  }
 0x35e   :  { %673 = vmatprep.subr.bf16.mxu1 %v2081_v19  ;;  %v2089_v24 = vld [vmem:[#allocation2 + $0x40] ss:$8 sps:$4 sm:$0xff]   ;;  %v2090_v25 = vld [vmem:[#allocation2 + $0x34] ss:$8 sps:$4 sm:$0xff]   ;;  %v2092_v26 = vld [vmem:[#allocation2 + $0x30] ss:$8 sps:$4 sm:$0xff]  }
 0x35f   :  { %v2093_v27 = vld [vmem:[#allocation2 + $0x24] ss:$8 sps:$4 sm:$0xff]   ;;  %v2095_v28 = vld [vmem:[#allocation2 + $0x20] ss:$8 sps:$4 sm:$0xff]   ;;  %v2096_v29 = vld [vmem:[#allocation2 + $0x14] ss:$8 sps:$4 sm:$0xff]  }
 0x360   :  { %v2098_v30 = vld [vmem:[#allocation2 + $0x10] ss:$8 sps:$4 sm:$0xff]   ;;  %v2099_v31 = vld [vmem:[#allocation2 + $0x4] ss:$8 sps:$4 sm:$0xff]   ;;  %v2101_v32 = vld [vmem:[#allocation2] ss:$8 sps:$4 sm:$0xff]  }
 0x361   :  { %674 = vmatpush1.bf16.msra.mxu1 %v2083_v20  ;;  %v2773_v35 = vshrl.u32 %v581_v34, 7  ;;  %v579_v37 = vld [vmem:[%s2860_s14] sm:$0x3] }
 0x362   :  { %675 = vmatprep.subr.bf16.mxu1 %v2084_v21 }
 0x363   :  { %v2776_v36 = vsub.s32 0, %v2773_v35  ;;  %v2782_v38 = vsub.s32 1, %v2773_v35 }
 0x365   :  { %676 = vmatpush1.bf16.msra.mxu1 %v2086_v22  ;;  %v584_v39 = vrot.slane %v579_v37, %v2776_v36  ;;  %v588_v41 = vrot.slane %v579_v37, %v2782_v38 }
 0x366   :  { %677 = vmatprep.subr.bf16.mxu1 %v2087_v23 }
 0x369   :  { %678 = vmatpush1.bf16.msra.mxu1 %v2089_v24 }
 0x36a   :  { %679 = vmatprep.subr.bf16.mxu1 %v2090_v25 }
 0x36d   :  { %680 = vmatpush1.bf16.msra.mxu1 %v2092_v26 }
 0x36e   :  { %681 = vmatprep.subr.bf16.mxu1 %v2093_v27  ;;  %v766_v27 = vld [vmem:[%s2861_s15] sm:$0x3] }
 0x371   :  { %682 = vmatpush1.bf16.msra.mxu1 %v2095_v28  ;;  %v782_v28 = vld [vmem:[%s2862_s16] sm:$0x3] }
 0x372   :  { %683 = vmatprep.subr.bf16.mxu1 %v2096_v29 }
 0x375   :  { %684 = vmatpush1.bf16.msra.mxu1 %v2098_v30 }
 0x376   :  { %685 = vmatprep.subr.bf16.mxu1 %v2099_v31  ;;  %v771_v31 = vrot.slane %v766_v27, %v2776_v36 }
 0x379   :  { %686 = vmatpush1.bf16.msra.mxu1 %v2101_v32 }
 0x37c   :  { %704 = vmatmul.mubr.bf16.vlgmr.msra.gmra.mxu1 %v578_v33  ;;  %v787_v33 = vrot.slane %v782_v28, %v2776_v36 }
 0x43c   :  { %v705_v40 = vpop.f32.mrf.mxu1 }
 0x43d   :  { %v706_v43 = vadd.f32 %v705_v40, %v584_v39 }
 0x43e   :  { %v707_v42 = vpop.f32.mrf.mxu1 }
 0x43f   :  { %v2786_v44 = vadd.f32 %v707_v42, %v588_v41  ;;  %v730_v48 = vmul.f32 %v706_v43, %v706_v43 }
 0x440   :  { %v709_v45 = vpop.f32.mrf.mxu1 }
 0x441   :  { %v710_v46 = vadd.f32 %v709_v45, %v584_v39  ;;  %v731_v52 = vmul.f32 %v2786_v44, %v2786_v44 }
 0x442   :  { %v711_v47 = vpop.f32.mrf.mxu1 }
 0x443   :  { %v714_v49 = vadd.f32 %v710_v46, %v706_v43  ;;  %v732_v50 = vmul.f32 %v710_v46, %v710_v46  ;;  %v712_v51 = vadd.f32 %v711_v47, %v588_v41  ;;  %v775_v41 = vrot.slane %v766_v27, %v2782_v38 }
 0x445   :  { %v715_v53 = vrot.slane %v714_v49, 4  ;;  %v734_v54 = vadd.f32 %v732_v50, %v730_v48  ;;  %v721_v55 = vadd.f32 %v712_v51, %v2786_v44  ;;  %v733_v56 = vmul.f32 %v712_v51, %v712_v51 }
 0x446   :  { %v791_v48 = vrot.slane %v782_v28, %v2782_v38 }
 0x447   :  { %v716_v57 = vadd.f32 %v715_v53, %v714_v49  ;;  %v735_v58 = vrot.slane %v734_v54, 4  ;;  %v722_v59 = vrot.slane %v721_v55, 4  ;;  %v741_v60 = vadd.f32 %v733_v56, %v731_v52 }
 0x449   :  { %v717_v61 = vrot.slane %v716_v57, 2  ;;  %v736_v62 = vadd.f32 %v735_v58, %v734_v54  ;;  %v723_v63 = vadd.f32 %v722_v59, %v721_v55  ;;  %v742_v1 = vrot.slane %v741_v60, 4 }
 0x44b   :  { %v718_v2 = vadd.f32 %v717_v61, %v716_v57  ;;  %v737_v3 = vrot.slane %v736_v62, 2  ;;  %v724_v4 = vrot.slane %v723_v63, 2  ;;  %v743_v5 = vadd.f32 %v742_v1, %v741_v60 }
 0x44d   :  { %v719_v6 = vrot.slane %v718_v2, 1  ;;  %v738_v0 = vadd.f32 %v737_v3, %v736_v62  ;;  %v725_v7 = vadd.f32 %v724_v4, %v723_v63  ;;  %v744_v8 = vrot.slane %v743_v5, 2 }
 0x44f   :  { %v720_v9 = vadd.f32 %v719_v6, %v718_v2  ;;  %v739_v10 = vrot.slane %v738_v0, 1  ;;  %v726_v11 = vrot.slane %v725_v7, 1  ;;  %v745_v12 = vadd.f32 %v744_v8, %v743_v5 }
 0x451   :  { %v728_v13 = vmul.f32 0.0625, %v720_v9  ;;  %v740_v14 = vadd.f32 %v739_v10, %v738_v0  ;;  %v727_v15 = vadd.f32 %v726_v11, %v725_v7  ;;  %v746_v16 = vrot.slane %v745_v12, 1 }
 0x453   :  { %v748_v17 = vmul.f32 0.0625, %v740_v14  ;;  %v750_v18 = vmul.f32 %v728_v13, %v728_v13  ;;  %v729_v19 = vmul.f32 0.0625, %v727_v15  ;;  %v747_v20 = vadd.f32 %v746_v16, %v745_v12 }
 0x454   :  { %v754_v29 = vsub.f32 %v706_v43, %v728_v13  ;;  %v756_v30 = vsub.f32 %v710_v46, %v728_v13 }
 0x455   :  { %v752_v21 = vsub.f32 %v748_v17, %v750_v18  ;;  %v749_v22 = vmul.f32 0.0625, %v747_v20  ;;  %v751_v23 = vmul.f32 %v729_v19, %v729_v19  ;;  %v755_v39 = vsub.f32 %v2786_v44, %v729_v19 }
 0x456   :  { %v757_v40 = vsub.f32 %v712_v51, %v729_v19 }
 0x457   :  { %v758_v24 = vadd.f32 1e-05, %v752_v21  ;;  %v753_v25 = vsub.f32 %v749_v22, %v751_v23 }
 0x459   :  { %2102 = vrsqrt.f32 %v758_v24  ;;  %v759_v26 = vadd.f32 1e-05, %v753_v25 }
 0x45b   :  { %2104 = vrsqrt.f32 %v759_v26 }
 0x466   :  { %v2103_v32 = vpop.eup %2102 }
 0x467   :  { %v762_v34 = vmul.f32 %v2103_v32, %v754_v29  ;;  %v764_v37 = vmul.f32 %v2103_v32, %v756_v30 }
 0x468   :  { %v2105_v42 = vpop.eup %2104 }
 0x469   :  { %v778_v45 = vmul.f32 %v771_v31, %v762_v34  ;;  %v780_v47 = vmul.f32 %v771_v31, %v764_v37  ;;  %v763_v49 = vmul.f32 %v2105_v42, %v755_v39  ;;  %v765_v43 = vmul.f32 %v2105_v42, %v757_v40 }
 0x46b   :  { %v2802_v46 = vadd.f32 %v787_v33, %v778_v45  ;;  %v2804_v50 = vadd.f32 %v787_v33, %v780_v47  ;;  %v779_v52 = vmul.f32 %v775_v41, %v763_v49  ;;  %v781_v53 = vmul.f32 %v775_v41, %v765_v43 }
 0x46d   :  { %v798_v54 = vmax.f32 %v2802_v46, 0.0  ;;  %v800_v44 = vmax.f32 %v2804_v50, 0.0  ;;  %v795_v51 = vadd.f32 %v791_v48, %v779_v52  ;;  %v797_v55 = vadd.f32 %v791_v48, %v781_v53 }
 0x46f   :  { %v799_v56 = vmax.f32 %v795_v51, 0.0  ;;  %v801_v57 = vmax.f32 %v797_v55, 0.0 }
 0x470   :  { %2574 = dma.done.wait [#allocation4 + $0x1], 14336 }
 0x471   :  { %2575 = vsyncadd [#allocation4 + $0x1], 4294952960  ;;  %v2808_v58 = vpack.c.bf16 %v801_v57, %v799_v56  ;;  %v2106_v59 = vld [vmem:[#allocation3 + $0x18c] ss:$28 sps:$4 sm:$0xff]   ;;  %v2109_v61 = vld [vmem:[#allocation3 + $0x154] ss:$28 sps:$4 sm:$0xff]  }
 0x472   :  { %v2108_v60 = vld [vmem:[#allocation3 + $0x188] ss:$28 sps:$4 sm:$0xff]   ;;  %1549 = vmatprep.subr.bf16.mxu0 %v2106_v59  ;;  %v2111_v62 = vld [vmem:[#allocation3 + $0x150] ss:$28 sps:$4 sm:$0xff]   ;;  %v2112_v63 = vld [vmem:[#allocation3 + $0x11c] ss:$28 sps:$4 sm:$0xff]  }
 0x473   :  { %1581 = vmatprep.mubr.bf16.mxu0 %v2808_v58  ;;  %1624 = vmatprep.mubr.bf16.mxu1 %v2808_v58  ;;  %v2114_v1 = vld [vmem:[#allocation3 + $0x118] ss:$28 sps:$4 sm:$0xff]   ;;  %v2115_v2 = vld [vmem:[#allocation3 + $0xe4] ss:$28 sps:$4 sm:$0xff]   ;;  %v2129_v4 = vld [vmem:[#allocation3 + $0x190] ss:$28 sps:$4 sm:$0xff]  }
 0x474   :  { %1550 = vmatpush1.bf16.msra.mxu0 %v2108_v60  ;;  %v2126_v3 = vld [vmem:[#allocation3 + $0x194] ss:$28 sps:$4 sm:$0xff]   ;;  %v2117_v5 = vld [vmem:[#allocation3 + $0xe0] ss:$28 sps:$4 sm:$0xff]   ;;  %v2118_v6 = vld [vmem:[#allocation3 + $0xac] ss:$28 sps:$4 sm:$0xff]  }
 0x475   :  { %1551 = vmatprep.subr.bf16.mxu0 %v2109_v61  ;;  %1592 = vmatprep.subr.bf16.mxu1 %v2126_v3  ;;  %v2132_v0 = vld [vmem:[#allocation3 + $0x15c] ss:$28 sps:$4 sm:$0xff]   ;;  %v2120_v8 = vld [vmem:[#allocation3 + $0xa8] ss:$28 sps:$4 sm:$0xff]   ;;  %v2121_v9 = vld [vmem:[#allocation3 + $0x74] ss:$28 sps:$4 sm:$0xff]  }
 0x476   :  { %1593 = vmatpush1.bf16.msra.mxu1 %v2129_v4  ;;  %v2135_v7 = vld [vmem:[#allocation3 + $0x158] ss:$28 sps:$4 sm:$0xff]   ;;  %v2138_v10 = vld [vmem:[#allocation3 + $0x124] ss:$28 sps:$4 sm:$0xff]   ;;  %v2144_v12 = vld [vmem:[#allocation3 + $0xec] ss:$28 sps:$4 sm:$0xff]  }
 0x477   :  { %1594 = vmatprep.subr.bf16.mxu1 %v2132_v0  ;;  %v2141_v11 = vld [vmem:[#allocation3 + $0x120] ss:$28 sps:$4 sm:$0xff]   ;;  %v2123_v13 = vld [vmem:[#allocation3 + $0x70] ss:$28 sps:$4 sm:$0xff]   ;;  %v2147_v15 = vld [vmem:[#allocation3 + $0xe8] ss:$28 sps:$4 sm:$0xff]  }
 0x478   :  { %1552 = vmatpush1.bf16.msra.mxu0 %v2111_v62  ;;  %v2124_v14 = vld [vmem:[#allocation3 + $0x3c] ss:$28 sps:$4 sm:$0xff]   ;;  %v2150_v16 = vld [vmem:[#allocation3 + $0xb4] ss:$28 sps:$4 sm:$0xff]   ;;  %v2130_v18 = vld [vmem:[#allocation3 + $0x4] ss:$28 sps:$4 sm:$0xff]  }
 0x479   :  { %1553 = vmatprep.subr.bf16.mxu0 %v2112_v63  ;;  %v2128_v17 = vld [vmem:[#allocation3 + $0x38] ss:$28 sps:$4 sm:$0xff]   ;;  %v2153_v19 = vld [vmem:[#allocation3 + $0xb0] ss:$28 sps:$4 sm:$0xff]   ;;  %v2134_v21 = vld [vmem:[#allocation3] ss:$28 sps:$4 sm:$0xff]  }
 0x47a   :  { %1595 = vmatpush1.bf16.msra.mxu1 %v2135_v7  ;;  %v2156_v20 = vld [vmem:[#allocation3 + $0x7c] ss:$28 sps:$4 sm:$0xff]   ;;  %v2136_v22 = vld [vmem:[#allocation3 + $0x34c] ss:$28 sps:$4 sm:$0xff]   ;;  %v2162_v24 = vld [vmem:[#allocation3 + $0x44] ss:$28 sps:$4 sm:$0xff]  }
 0x47b   :  { %1596 = vmatprep.subr.bf16.mxu1 %v2138_v10  ;;  %v2159_v23 = vld [vmem:[#allocation3 + $0x78] ss:$28 sps:$4 sm:$0xff]   ;;  %v2140_v25 = vld [vmem:[#allocation3 + $0x348] ss:$28 sps:$4 sm:$0xff]   ;;  %v2165_v27 = vld [vmem:[#allocation3 + $0x40] ss:$28 sps:$4 sm:$0xff]  }
 0x47c   :  { %1554 = vmatpush1.bf16.msra.mxu0 %v2114_v1  ;;  %v2142_v26 = vld [vmem:[#allocation3 + $0x314] ss:$28 sps:$4 sm:$0xff]   ;;  %v2168_v28 = vld [vmem:[#allocation3 + $0xc] ss:$28 sps:$4 sm:$0xff]   ;;  %v2148_v30 = vld [vmem:[#allocation3 + $0x2dc] ss:$28 sps:$4 sm:$0xff]  }
 0x47d   :  { %1555 = vmatprep.subr.bf16.mxu0 %v2115_v2  ;;  %v2146_v29 = vld [vmem:[#allocation3 + $0x310] ss:$28 sps:$4 sm:$0xff]   ;;  %v2171_v31 = vld [vmem:[#allocation3 + $0x8] ss:$28 sps:$4 sm:$0xff]   ;;  %v2152_v33 = vld [vmem:[#allocation3 + $0x2d8] ss:$28 sps:$4 sm:$0xff]   ;;  %v2816_v2 = vpack.c.bf16 %v800_v44, %v798_v54 }
 0x47e   :  { %1597 = vmatpush1.bf16.msra.mxu1 %v2141_v11  ;;  %v2174_v32 = vld [vmem:[#allocation3 + $0x354] ss:$28 sps:$4 sm:$0xff]   ;;  %v2154_v34 = vld [vmem:[#allocation3 + $0x2a4] ss:$28 sps:$4 sm:$0xff]   ;;  %v2180_v39 = vld [vmem:[#allocation3 + $0x31c] ss:$28 sps:$4 sm:$0xff]  }
 0x47f   :  { %1598 = vmatprep.subr.bf16.mxu1 %v2144_v12  ;;  %v2177_v37 = vld [vmem:[#allocation3 + $0x350] ss:$28 sps:$4 sm:$0xff]   ;;  %v2158_v40 = vld [vmem:[#allocation3 + $0x2a0] ss:$28 sps:$4 sm:$0xff]   ;;  %v2183_v42 = vld [vmem:[#allocation3 + $0x318] ss:$28 sps:$4 sm:$0xff]  }
 0x480   :  { %1556 = vmatpush1.bf16.msra.mxu0 %v2117_v5  ;;  %v2160_v41 = vld [vmem:[#allocation3 + $0x26c] ss:$28 sps:$4 sm:$0xff]   ;;  %v2184_v45 = vld [vmem:[#allocation3 + $0x2e4] ss:$28 sps:$4 sm:$0xff]   ;;  %v2166_v48 = vld [vmem:[#allocation3 + $0x234] ss:$28 sps:$4 sm:$0xff]  }
 0x481   :  { %1557 = vmatprep.subr.bf16.mxu0 %v2118_v6  ;;  %v2164_v47 = vld [vmem:[#allocation3 + $0x268] ss:$28 sps:$4 sm:$0xff]   ;;  %v2189_v49 = vld [vmem:[#allocation3 + $0x2e0] ss:$28 sps:$4 sm:$0xff]   ;;  %v2170_v52 = vld [vmem:[#allocation3 + $0x230] ss:$28 sps:$4 sm:$0xff]  }
 0x482   :  { %1599 = vmatpush1.bf16.msra.mxu1 %v2147_v15  ;;  %v2190_v43 = vld [vmem:[#allocation3 + $0x2ac] ss:$28 sps:$4 sm:$0xff]   ;;  %v2172_v53 = vld [vmem:[#allocation3 + $0x1fc] ss:$28 sps:$4 sm:$0xff]   ;;  %v2196_v55 = vld [vmem:[#allocation3 + $0x274] ss:$28 sps:$4 sm:$0xff]  }
 0x483   :  { %1600 = vmatprep.subr.bf16.mxu1 %v2150_v16  ;;  %v2195_v51 = vld [vmem:[#allocation3 + $0x2a8] ss:$28 sps:$4 sm:$0xff]   ;;  %v2176_v56 = vld [vmem:[#allocation3 + $0x1f8] ss:$28 sps:$4 sm:$0xff]   ;;  %v2201_v59 = vld [vmem:[#allocation3 + $0x270] ss:$28 sps:$4 sm:$0xff]  }
 0x484   :  { %1558 = vmatpush1.bf16.msra.mxu0 %v2120_v8  ;;  %v2178_v57 = vld [vmem:[#allocation3 + $0x1c4] ss:$28 sps:$4 sm:$0xff]   ;;  %v2202_v60 = vld [vmem:[#allocation3 + $0x23c] ss:$28 sps:$4 sm:$0xff]   ;;  %v2214_v6 = vld [vmem:[#allocation3 + $0x1cc] ss:$28 sps:$4 sm:$0xff]  }
 0x485   :  { %1559 = vmatprep.subr.bf16.mxu0 %v2121_v9  ;;  %v2182_v61 = vld [vmem:[#allocation3 + $0x1c0] ss:$28 sps:$4 sm:$0xff]   ;;  %v2207_v63 = vld [vmem:[#allocation3 + $0x238] ss:$28 sps:$4 sm:$0xff]   ;;  %v2200_v46 = vld [vmem:[#allocation3 + $0x12c] ss:$28 sps:$4 sm:$0xff]  }
 0x486   :  { %1601 = vmatpush1.bf16.msra.mxu1 %v2153_v19  ;;  %v2188_v62 = vld [vmem:[#allocation3 + $0x19c] ss:$28 sps:$4 sm:$0xff]   ;;  %v2208_v1 = vld [vmem:[#allocation3 + $0x204] ss:$28 sps:$4 sm:$0xff]   ;;  %v2206_v7 = vld [vmem:[#allocation3 + $0xf4] ss:$28 sps:$4 sm:$0xff]  }
 0x487   :  { %1602 = vmatprep.subr.bf16.mxu1 %v2156_v20  ;;  %v2186_v3 = vld [vmem:[#allocation3 + $0x198] ss:$28 sps:$4 sm:$0xff]   ;;  %v2194_v4 = vld [vmem:[#allocation3 + $0x164] ss:$28 sps:$4 sm:$0xff]   ;;  %v2204_v10 = vld [vmem:[#allocation3 + $0xf0] ss:$28 sps:$4 sm:$0xff]  }
 0x488   :  { %1560 = vmatpush1.bf16.msra.mxu0 %v2123_v13  ;;  %v2213_v5 = vld [vmem:[#allocation3 + $0x200] ss:$28 sps:$4 sm:$0xff]   ;;  %v2219_v50 = vld [vmem:[#allocation3 + $0x1c8] ss:$28 sps:$4 sm:$0xff]   ;;  %v2233_v13 = vld [vmem:[#allocation3 + $0x2f0] ss:$28 sps:$4 sm:$0xff]  }
 0x489   :  { %1561 = vmatprep.subr.bf16.mxu0 %v2124_v14  ;;  %v2192_v0 = vld [vmem:[#allocation3 + $0x160] ss:$28 sps:$4 sm:$0xff]   ;;  %v2198_v44 = vld [vmem:[#allocation3 + $0x128] ss:$28 sps:$4 sm:$0xff]   ;;  %v2210_v14 = vld [vmem:[#allocation3 + $0xb8] ss:$28 sps:$4 sm:$0xff]  }
 0x48a   :  { %1603 = vmatpush1.bf16.msra.mxu1 %v2159_v23  ;;  %v2223_v54 = vld [vmem:[#allocation3 + $0x360] ss:$28 sps:$4 sm:$0xff]   ;;  %v2228_v9 = vld [vmem:[#allocation3 + $0x328] ss:$28 sps:$4 sm:$0xff]   ;;  %v2234_v16 = vld [vmem:[#allocation3 + $0x130] ss:$28 sps:$4 sm:$0xff]  }
 0x48b   :  { %1604 = vmatprep.subr.bf16.mxu1 %v2162_v24  ;;  %v2224_v8 = vld [vmem:[#allocation3 + $0x1a0] ss:$28 sps:$4 sm:$0xff]   ;;  %v2229_v12 = vld [vmem:[#allocation3 + $0x168] ss:$28 sps:$4 sm:$0xff]   ;;  %v2239_v20 = vld [vmem:[#allocation3 + $0xf8] ss:$28 sps:$4 sm:$0xff]  }
 0x48c   :  { %1562 = vmatpush1.bf16.msra.mxu0 %v2128_v17  ;;  %v2212_v11 = vld [vmem:[#allocation3 + $0xbc] ss:$28 sps:$4 sm:$0xff]   ;;  %v2218_v15 = vld [vmem:[#allocation3 + $0x84] ss:$28 sps:$4 sm:$0xff]   ;;  %v2222_v19 = vld [vmem:[#allocation3 + $0x4c] ss:$28 sps:$4 sm:$0xff]  }
 0x48d   :  { %1563 = vmatprep.subr.bf16.mxu0 %v2130_v18  ;;  %v2238_v17 = vld [vmem:[#allocation3 + $0x2b8] ss:$28 sps:$4 sm:$0xff]   ;;  %v2216_v18 = vld [vmem:[#allocation3 + $0x80] ss:$28 sps:$4 sm:$0xff]   ;;  %v2248_v24 = vld [vmem:[#allocation3 + $0x248] ss:$28 sps:$4 sm:$0xff]  }
 0x48e   :  { %1605 = vmatpush1.bf16.msra.mxu1 %v2165_v27  ;;  %v2244_v23 = vld [vmem:[#allocation3 + $0xc0] ss:$28 sps:$4 sm:$0xff]   ;;  %v2249_v27 = vld [vmem:[#allocation3 + $0x88] ss:$28 sps:$4 sm:$0xff]  }
 0x48f   :  { %1606 = vmatprep.subr.bf16.mxu1 %v2168_v28  ;;  %v2253_v28 = vld [vmem:[#allocation3 + $0x210] ss:$28 sps:$4 sm:$0xff]  }
 0x490   :  { %1564 = vmatpush1.bf16.msra.mxu0 %v2134_v21  ;;  %v2243_v21 = vld [vmem:[#allocation3 + $0x280] ss:$28 sps:$4 sm:$0xff]  }
 0x491   :  { %1565 = vmatprep.subr.bf16.mxu0 %v2136_v22  ;;  %v2220_v22 = vld [vmem:[#allocation3 + $0x48] ss:$28 sps:$4 sm:$0xff]  }
 0x492   :  { %1607 = vmatpush1.bf16.msra.mxu1 %v2171_v31  ;;  %v2254_v31 = vld [vmem:[#allocation3 + $0x50] ss:$28 sps:$4 sm:$0xff]  }
 0x493   :  { %1608 = vmatprep.subr.bf16.mxu1 %v2174_v32  ;;  %v2258_v32 = vld [vmem:[#allocation3 + $0x1d8] ss:$28 sps:$4 sm:$0xff]  }
 0x494   :  { %1566 = vmatpush2.bf16.msra.mxu0 %v2140_v25  ;;  %v2225_v25 = vld [vmem:[#allocation3 + $0x10] ss:$28 sps:$4 sm:$0xff]  }
 0x495   :  { %1567 = vmatprep.subr.bf16.mxu0 %v2142_v26  ;;  %v2232_v26 = vld [vmem:[#allocation3 + $0x35c] ss:$28 sps:$4 sm:$0xff]  }
 0x496   :  { %1609 = vmatpush2.bf16.msra.mxu1 %v2177_v37  ;;  %v2259_v37 = vld [vmem:[#allocation3 + $0x18] ss:$28 sps:$4 sm:$0xff]  }
 0x497   :  { %1610 = vmatprep.subr.bf16.mxu1 %v2180_v39  ;;  %v2240_v39 = vld [vmem:[#allocation3 + $0x2e8] ss:$28 sps:$4 sm:$0xff]  }
 0x498   :  { %1568 = vmatpush2.bf16.msra.mxu0 %v2146_v29  ;;  %v2230_v29 = vld [vmem:[#allocation3 + $0x358] ss:$28 sps:$4 sm:$0xff]  }
 0x499   :  { %1569 = vmatprep.subr.bf16.mxu0 %v2148_v30  ;;  %v2237_v30 = vld [vmem:[#allocation3 + $0x324] ss:$28 sps:$4 sm:$0xff]  }
 0x49a   :  { %1611 = vmatpush2.bf16.msra.mxu1 %v2183_v42  ;;  %v2252_v42 = vld [vmem:[#allocation3 + $0x27c] ss:$28 sps:$4 sm:$0xff]  }
 0x49b   :  { %1612 = vmatprep.subr.bf16.mxu1 %v2184_v45  ;;  %v2250_v45 = vld [vmem:[#allocation3 + $0x278] ss:$28 sps:$4 sm:$0xff]  }
 0x49c   :  { %1570 = vmatpush2.bf16.msra.mxu0 %v2152_v33  ;;  %v2235_v33 = vld [vmem:[#allocation3 + $0x320] ss:$28 sps:$4 sm:$0xff]  }
 0x49d   :  { %1571 = vmatprep.subr.bf16.mxu0 %v2154_v34  ;;  %v2242_v34 = vld [vmem:[#allocation3 + $0x2ec] ss:$28 sps:$4 sm:$0xff]  }
 0x49e   :  { %1613 = vmatpush2.bf16.msra.mxu1 %v2189_v49  ;;  %v2262_v49 = vld [vmem:[#allocation3 + $0x20c] ss:$28 sps:$4 sm:$0xff]  }
 0x49f   :  { %1614 = vmatprep.subr.bf16.mxu1 %v2190_v43  ;;  %v2260_v43 = vld [vmem:[#allocation3 + $0x208] ss:$28 sps:$4 sm:$0xff]  }
 0x4a0   :  { %1572 = vmatpush2.bf16.msra.mxu0 %v2158_v40  ;;  %v2247_v40 = vld [vmem:[#allocation3 + $0x2b4] ss:$28 sps:$4 sm:$0xff]  }
 0x4a1   :  { %1573 = vmatprep.subr.bf16.mxu0 %v2160_v41  ;;  %v2245_v41 = vld [vmem:[#allocation3 + $0x2b0] ss:$28 sps:$4 sm:$0xff]  }
 0x4a2   :  { %1615 = vmatpush2.bf16.msra.mxu1 %v2195_v51  ;;  %v2827_v51 = vld [vmem:[%s2864_s18] sm:$0xff]  ;;  %s2596_s18 = smov [#allocation20]  }
 0x4a3   :  { %1616 = vmatprep.subr.bf16.mxu1 %v2196_v55  ;;  %v941_v55 = vrot.slane %v2827_v51, %v2776_v36  ;;  %s1808_s5 = sshll.u32 %s2596_s18, 4  ;;  %s1809_s5 = int_to_ptr.vmem [resolvable:$true] %s1808_s5 }
 0x4a4   :  { %1574 = vmatpush2.bf16.msra.mxu0 %v2164_v47  ;;  %v2257_v47 = vld [vmem:[#allocation3 + $0x244] ss:$28 sps:$4 sm:$0xff]   ;;  %s2542_s28 = scalar_lea.vmem %s1809_s5, 1792  ;;  %p2547_p0 = scmp.lt.s32.totalorder %s1809_s5, %s1809_s5 }
 0x4a5   :  { %1575 = vmatprep.subr.bf16.mxu0 %v2166_v48  ;;  %v2255_v48 = vld [vmem:[#allocation3 + $0x240] ss:$28 sps:$4 sm:$0xff]   ;;  %p2543_p13 = scmp.ne.s32.totalorder %s1809_s5, %s2542_s28  ;;  %p2548_p1 = scmp.lt.s32.totalorder %s2542_s28, %s2542_s28 }
 0x4a6   :  { %1617 = vmatpush2.bf16.msra.mxu1 %v2201_v59 }
 0x4a7   :  { %1618 = vmatprep.subr.bf16.mxu1 %v2202_v60  ;;  %p2549_p2 = por %p2548_p1, %p2547_p0 }
 0x4a8   :  { %1576 = vmatpush2.bf16.msra.mxu0 %v2170_v52  ;;  %v2265_v52 = vld [vmem:[#allocation3 + $0x1d4] ss:$28 sps:$4 sm:$0xff]  }
 0x4a9   :  { %1577 = vmatprep.subr.bf16.mxu0 %v2172_v53  ;;  %v2263_v53 = vld [vmem:[#allocation3 + $0x1d0] ss:$28 sps:$4 sm:$0xff]   ;;  %p2550_p3 = pnand %p2549_p2, %p2543_p13 }
 0x4aa   :  { %1619 = vmatpush2.bf16.msra.mxu1 %v2207_v63 }
 0x4ab   :  { %1620 = vmatprep.subr.bf16.mxu1 %v2208_v1 }
 0x4ac   :  { %1578 = vmatpush2.bf16.msra.mxu0 %v2176_v56  ;;  %v945_v56 = vrot.slane %v2827_v51, %v2782_v38 }
 0x4ad   :  { %1579 = vmatprep.subr.bf16.mxu0 %v2178_v57 }
 0x4ae   :  { %1621 = vmatpush2.bf16.msra.mxu1 %v2213_v5 }
 0x4af   :  { %1622 = vmatprep.subr.bf16.mxu1 %v2214_v6 }
 0x4b0   :  { %1580 = vmatpush2.bf16.msra.mxu0 %v2182_v61  ;;  %v948_v61 = vsub.s32 2, %v2773_v35 }
 0x4b1   :  { %1635 = vmatprep.subr.bf16.mxu0 %v2188_v62 }
 0x4b2   :  { %1623 = vmatpush2.bf16.msra.mxu1 %v2219_v50 }
 0x4b3   :  { %1582 = vmatmul.mubr.bf16.vlgmr.msra.gmra.mxu0 %v2816_v2  ;;  %1996 = vmatprep.subr.bf16.mxu1 %v2223_v54 }
 0x4b4   :  { %1636 = vmatpush1.bf16.msra.mxu0 %v2186_v3  ;;  %1667 = vmatprep.mubr.bf16.mxu0 %v2808_v58 }
 0x4b5   :  { %1637 = vmatprep.subr.bf16.mxu0 %v2194_v4  ;;  %1625 = vmatmul.mubr.bf16.vlgmr.msra.gmra.mxu1 %v2816_v2 }
 0x4b6   :  { %1997 = vmatpush3.bf16.msra.mxu1 %v2224_v8  ;;  %1710 = vmatprep.mubr.bf16.mxu1 %v2808_v58  ;;  %v2227_v58 = vld [vmem:[#allocation3 + $0x14] ss:$28 sps:$4 sm:$0xff]  }
 0x4b7   :  { %1998 = vmatprep.subr.bf16.mxu1 %v2228_v9 }
 0x4b8   :  { %1638 = vmatpush1.bf16.msra.mxu0 %v2192_v0  ;;  %v949_v0 = vrot.slane %v2827_v51, %v948_v61 }
 0x4b9   :  { %1639 = vmatprep.subr.bf16.mxu0 %v2200_v46 }
 0x4ba   :  { %1999 = vmatpush3.bf16.msra.mxu1 %v2229_v12 }
 0x4bb   :  { %2000 = vmatprep.subr.bf16.mxu1 %v2233_v13 }
 0x4bc   :  { %1640 = vmatpush1.bf16.msra.mxu0 %v2198_v44 }
 0x4bd   :  { %1641 = vmatprep.subr.bf16.mxu0 %v2206_v7 }
 0x4be   :  { %2001 = vmatpush3.bf16.msra.mxu1 %v2234_v16 }
 0x4bf   :  { %2002 = vmatprep.subr.bf16.mxu1 %v2238_v17 }
 0x4c0   :  { %1642 = vmatpush1.bf16.msra.mxu0 %v2204_v10 }
 0x4c1   :  { %1643 = vmatprep.subr.bf16.mxu0 %v2212_v11 }
 0x4c2   :  { %2003 = vmatpush3.bf16.msra.mxu1 %v2239_v20 }
 0x4c3   :  { %2004 = vmatprep.subr.bf16.mxu1 %v2243_v21 }
 0x4c4   :  { %1644 = vmatpush1.bf16.msra.mxu0 %v2210_v14 }
 0x4c5   :  { %1645 = vmatprep.subr.bf16.mxu0 %v2218_v15 }
 0x4c6   :  { %2005 = vmatpush3.bf16.msra.mxu1 %v2244_v23 }
 0x4c7   :  { %2006 = vmatprep.subr.bf16.mxu1 %v2248_v24 }
 0x4c8   :  { %1646 = vmatpush1.bf16.msra.mxu0 %v2216_v18 }
 0x4c9   :  { %1647 = vmatprep.subr.bf16.mxu0 %v2222_v19 }
 0x4ca   :  { %2007 = vmatpush3.bf16.msra.mxu1 %v2249_v27 }
 0x4cb   :  { %2008 = vmatprep.subr.bf16.mxu1 %v2253_v28 }
 0x4cc   :  { %1648 = vmatpush1.bf16.msra.mxu0 %v2220_v22 }
 0x4cd   :  { %1649 = vmatprep.subr.bf16.mxu0 %v2227_v58 }
 0x4ce   :  { %2009 = vmatpush3.bf16.msra.mxu1 %v2254_v31 }
 0x4cf   :  { %2010 = vmatprep.subr.bf16.mxu1 %v2258_v32 }
 0x4d0   :  { %1650 = vmatpush1.bf16.msra.mxu0 %v2225_v25 }
 0x4d1   :  { %1651 = vmatprep.subr.bf16.mxu0 %v2232_v26 }
 0x4d2   :  { %2011 = vmatpush3.bf16.msra.mxu1 %v2259_v37 }
 0x4d4   :  { %1652 = vmatpush2.bf16.msra.mxu0 %v2230_v29 }
 0x4d5   :  { %1653 = vmatprep.subr.bf16.mxu0 %v2237_v30  ;;  %1711 = vmatmul.mubr.bf16.vlgmr.msra.gmra.mxu1 %v2816_v2 }
 0x4d8   :  { %1654 = vmatpush2.bf16.msra.mxu0 %v2235_v33 }
 0x4d9   :  { %1655 = vmatprep.subr.bf16.mxu0 %v2242_v34 }
 0x4dc   :  { %1656 = vmatpush2.bf16.msra.mxu0 %v2240_v39 }
 0x4dd   :  { %1657 = vmatprep.subr.bf16.mxu0 %v2247_v40 }
 0x4e0   :  { %1658 = vmatpush2.bf16.msra.mxu0 %v2245_v41 }
 0x4e1   :  { %1659 = vmatprep.subr.bf16.mxu0 %v2252_v42 }
 0x4e4   :  { %1660 = vmatpush2.bf16.msra.mxu0 %v2250_v45 }
 0x4e5   :  { %1661 = vmatprep.subr.bf16.mxu0 %v2257_v47  ;;  %v964_v47 = vsub.s32 6, %v2773_v35 }
 0x4e8   :  { %1662 = vmatpush2.bf16.msra.mxu0 %v2255_v48 }
 0x4e9   :  { %1663 = vmatprep.subr.bf16.mxu0 %v2262_v49 }
 0x4ec   :  { %1664 = vmatpush2.bf16.msra.mxu0 %v2260_v43 }
 0x4ed   :  { %1665 = vmatprep.subr.bf16.mxu0 %v2265_v52  ;;  %v965_v52 = vrot.slane %v2827_v51, %v964_v47 }
 0x4f0   :  { %1666 = vmatpush2.bf16.msra.mxu0 %v2263_v53 }
 0x4f3   :  { %1668 = vmatmul.mubr.bf16.vlgmr.msra.gmra.mxu0 %v2816_v2  ;;  %v952_v2 = vsub.s32 3, %v2773_v35 }
 0x4f5   :  { %v953_v50 = vrot.slane %v2827_v51, %v952_v2 }
 0x573   :  { %v1583_v57 = vpop.f32.mrf.mxu0 }
 0x574   :  { %v1584_v59 = vadd.f32 %v1583_v57, %v941_v55 }
 0x575   :  { %v1585_v60 = vpop.f32.mrf.mxu0  ;;  %v1626_v7 = vpop.f32.mrf.mxu1 }
 0x576   :  { %v1719_v62 = vsub.f32 0.0, %v1584_v59  ;;  %v1586_v63 = vadd.f32 %v1585_v60, %v945_v56  ;;  %v1627_v8 = vadd.f32 %v1626_v7, %v949_v0 }
 0x577   :  { %v1587_v1 = vpop.f32.mrf.mxu0  ;;  %v1628_v10 = vpop.f32.mrf.mxu1 }
 0x578   :  { %v1733_v3 = vmul.f32 1.442695, %v1719_v62  ;;  %v1720_v4 = vsub.f32 0.0, %v1586_v63  ;;  %v1588_v5 = vadd.f32 %v1587_v1, %v941_v55  ;;  %v1721_v11 = vsub.f32 0.0, %v1627_v8 }
 0x579   :  { %v1589_v6 = vpop.f32.mrf.mxu0  ;;  %v1629_v12 = vadd.f32 %v1628_v10, %v953_v50  ;;  %v1630_v13 = vpop.f32.mrf.mxu1 }
 0x57a   :  { %2266 = vpow2.f32 %v1733_v3  ;;  %v1735_v36 = vmul.f32 1.442695, %v1720_v4  ;;  %v1726_v46 = vsub.f32 0.0, %v1588_v5  ;;  %v1590_v38 = vadd.f32 %v1589_v6, %v945_v56 }
 0x57b   :  { %v1737_v14 = vmul.f32 1.442695, %v1721_v11  ;;  %v1722_v15 = vsub.f32 0.0, %v1629_v12  ;;  %v1631_v16 = vadd.f32 %v1630_v13, %v949_v0  ;;  %v1632_v17 = vpop.f32.mrf.mxu1  ;;  %v956_v0 = vsub.s32 4, %v2773_v35 }
 0x57c   :  { %2268 = vpow2.f32 %v1735_v36  ;;  %v1747_v54 = vmul.f32 1.442695, %v1726_v46  ;;  %v1727_v44 = vsub.f32 0.0, %v1590_v38  ;;  %v1633_v20 = vadd.f32 %v1632_v17, %v953_v50 }
 0x57d   :  { %v1739_v18 = vmul.f32 1.442695, %v1722_v15  ;;  %v1728_v19 = vsub.f32 0.0, %v1631_v16  ;;  %v960_v36 = vsub.s32 5, %v2773_v35  ;;  %v957_v46 = vrot.slane %v2827_v51, %v956_v0 }
 0x57e   :  { %2270 = vpow2.f32 %v1747_v54  ;;  %v1749_v9 = vmul.f32 1.442695, %v1727_v44  ;;  %v1729_v22 = vsub.f32 0.0, %v1633_v20 }
 0x57f   :  { %v1751_v21 = vmul.f32 1.442695, %v1728_v19  ;;  %v961_v38 = vrot.slane %v2827_v51, %v960_v36 }
 0x580   :  { %2272 = vpow2.f32 %v1749_v9  ;;  %v1753_v23 = vmul.f32 1.442695, %v1729_v22 }
 0x581   :  { %2274 = vpow2.f32 %v1737_v14 }
 0x582   :  { %2276 = vpow2.f32 %v1739_v18 }
 0x583   :  { %2278 = vpow2.f32 %v1751_v21 }
 0x584   :  { %2280 = vpow2.f32 %v1753_v23 }
 0x587   :  { %v2267_v58 = vpop.eup %2266 }
 0x588   :  { %v1761_v24 = vadd.f32 1.0, %v2267_v58 }
 0x589   :  { %v2269_v25 = vpop.eup %2268 }
 0x58a   :  { %2282 = vrcp.f32 %v1761_v24  ;;  %v1762_v26 = vadd.f32 1.0, %v2269_v25 }
 0x58b   :  { %v2271_v27 = vpop.eup %2270 }
 0x58c   :  { %2284 = vrcp.f32 %v1762_v26  ;;  %v1768_v28 = vadd.f32 1.0, %v2271_v27 }
 0x58d   :  { %v2273_v29 = vpop.eup %2272 }
 0x58e   :  { %2286 = vrcp.f32 %v1768_v28  ;;  %v1769_v30 = vadd.f32 1.0, %v2273_v29  ;;  %v2275_v31 = vpop.eup %2274 }
 0x58f   :  { %v1763_v32 = vadd.f32 1.0, %v2275_v31  ;;  %v2277_v33 = vpop.eup %2276 }
 0x590   :  { %2288 = vrcp.f32 %v1769_v30  ;;  %v1764_v34 = vadd.f32 1.0, %v2277_v33  ;;  %v2279_v37 = vpop.eup %2278 }
 0x591   :  { %2290 = vrcp.f32 %v1763_v32  ;;  %v1770_v39 = vadd.f32 1.0, %v2279_v37  ;;  %v2281_v40 = vpop.eup %2280 }
 0x592   :  { %2292 = vrcp.f32 %v1764_v34  ;;  %v1771_v42 = vadd.f32 1.0, %v2281_v40 }
 0x593   :  { %2294 = vrcp.f32 %v1770_v39 }
 0x594   :  { %2296 = vrcp.f32 %v1771_v42 }
 0x595   :  { %v2012_v49 = vpop.f32.mrf.mxu1 }
 0x597   :  { %v2283_v41 = vpop.eup %2282  ;;  %v2013_v53 = vpop.f32.mrf.mxu1 }
 0x598   :  { %1789 = vst [vmem:[#allocation20] sm:$0xff] %v2283_v41  ;;  %v2014_v55 = vadd.f32 %v2013_v53, %v2012_v49 }
 0x599   :  { %v2285_v45 = vpop.eup %2284  ;;  %v2015_v57 = vpop.f32.mrf.mxu1 }
 0x59a   :  { %1790 = vst [vmem:[#allocation20 + $0x8] sm:$0xff] %v2285_v45  ;;  %v1713_v59 = vadd.f32 %v2014_v55, %v965_v52 }
 0x59b   :  { %v2287_v48 = vpop.eup %2286  ;;  %v2016_v61 = vpop.f32.mrf.mxu1 }
 0x59c   :  { %1796 = vst [vmem:[#allocation20 + $0x38] sm:$0xff] %v2287_v48  ;;  %v1725_v62 = vsub.f32 0.0, %v1713_v59  ;;  %v2017_v63 = vadd.f32 %v2016_v61, %v2015_v57 }
 0x59d   :  { %v2289_v43 = vpop.eup %2288 }
 0x59e   :  { %1797 = vst [vmem:[#allocation20 + $0x40] sm:$0xff] %v2289_v43  ;;  %v2291_v56 = vpop.eup %2290  ;;  %v1745_v2 = vmul.f32 1.442695, %v1725_v62  ;;  %v1716_v3 = vadd.f32 %v2017_v63, %v965_v52 }
 0x59f   :  { %1791 = vst [vmem:[#allocation20 + $0x10] sm:$0xff] %v2291_v56  ;;  %v2293_v60 = vpop.eup %2292 }
 0x5a0   :  { %1792 = vst [vmem:[#allocation20 + $0x18] sm:$0xff] %v2293_v60  ;;  %v2295_v1 = vpop.eup %2294  ;;  %2298 = vpow2.f32 %v1745_v2  ;;  %v1732_v5 = vsub.f32 0.0, %v1716_v3 }
 0x5a1   :  { %1798 = vst [vmem:[#allocation20 + $0x48] sm:$0xff] %v2295_v1  ;;  %v2297_v4 = vpop.eup %2296 }
 0x5a2   :  { %1799 = vst [vmem:[#allocation20 + $0x50] sm:$0xff] %v2297_v4  ;;  %v1759_v6 = vmul.f32 1.442695, %v1732_v5 }
 0x5a4   :  { %2300 = vpow2.f32 %v1759_v6 }
 0x5ad   :  { %v2299_v54 = vpop.eup %2298 }
 0x5ae   :  { %v1767_v7 = vadd.f32 1.0, %v2299_v54 }
 0x5b0   :  { %2302 = vrcp.f32 %v1767_v7 }
 0x5b1   :  { %v2301_v12 = vpop.eup %2300 }
 0x5b2   :  { %v1774_v16 = vadd.f32 1.0, %v2301_v12 }
 0x5b3   :  { %v1669_v50 = vpop.f32.mrf.mxu0 }
 0x5b4   :  { %v1670_v44 = vadd.f32 %v1669_v50, %v957_v46 }
 0x5b5   :  { %v1671_v8 = vpop.f32.mrf.mxu0 }
 0x5b6   :  { %v1723_v9 = vsub.f32 0.0, %v1670_v44  ;;  %v1672_v10 = vadd.f32 %v1671_v8, %v961_v38 }
 0x5b7   :  { %v1673_v11 = vpop.f32.mrf.mxu0 }
 0x5b8   :  { %v1741_v13 = vmul.f32 1.442695, %v1723_v9  ;;  %v1724_v14 = vsub.f32 0.0, %v1672_v10  ;;  %v1674_v15 = vadd.f32 %v1673_v11, %v957_v46 }
 0x5b9   :  { %v1675_v17 = vpop.f32.mrf.mxu0 }
 0x5ba   :  { %2304 = vpow2.f32 %v1741_v13  ;;  %v1743_v35 = vmul.f32 1.442695, %v1724_v14  ;;  %v1730_v18 = vsub.f32 0.0, %v1674_v15  ;;  %v1676_v19 = vadd.f32 %v1675_v17, %v961_v38 }
 0x5bb   :  { %2306 = vrcp.f32 %v1774_v16 }
 0x5bc   :  { %2308 = vpow2.f32 %v1743_v35  ;;  %v1755_v51 = vmul.f32 1.442695, %v1730_v18  ;;  %v1731_v20 = vsub.f32 0.0, %v1676_v19 }
 0x5bd   :  { %v2303_v22 = vpop.eup %2302 }
 0x5be   :  { %2310 = vpow2.f32 %v1755_v51  ;;  %v1757_v21 = vmul.f32 1.442695, %v1731_v20  ;;  %1795 = vst [vmem:[#allocation20 + $0x30] sm:$0xff] %v2303_v22 }
 0x5c0   :  { %2312 = vpow2.f32 %v1757_v21 }
 0x5c7   :  { %v2305_v58 = vpop.eup %2304 }
 0x5c8   :  { %v2307_v23 = vpop.eup %2306  ;;  %v1765_v24 = vadd.f32 1.0, %v2305_v58 }
 0x5c9   :  { %v2309_v25 = vpop.eup %2308  ;;  %1802 = vst [vmem:[#allocation20 + $0x68] sm:$0xff] %v2307_v23 }
 0x5ca   :  { %2314 = vrcp.f32 %v1765_v24  ;;  %v1766_v26 = vadd.f32 1.0, %v2309_v25 }
 0x5cb   :  { %v2311_v27 = vpop.eup %2310 }
 0x5cc   :  { %2316 = vrcp.f32 %v1766_v26  ;;  %v1772_v28 = vadd.f32 1.0, %v2311_v27 }
 0x5cd   :  { %v2313_v29 = vpop.eup %2312 }
 0x5ce   :  { %2318 = vrcp.f32 %v1772_v28  ;;  %v1773_v30 = vadd.f32 1.0, %v2313_v29 }
 0x5d0   :  { %2320 = vrcp.f32 %v1773_v30 }
 0x5d7   :  { %v2315_v31 = vpop.eup %2314 }
 0x5d8   :  { %1793 = vst [vmem:[#allocation20 + $0x20] sm:$0xff] %v2315_v31 }
 0x5d9   :  { %v2317_v32 = vpop.eup %2316 }
 0x5da   :  { %1794 = vst [vmem:[#allocation20 + $0x28] sm:$0xff] %v2317_v32 }
 0x5db   :  { %v2319_v33 = vpop.eup %2318 }
 0x5dc   :  { %1800 = vst [vmem:[#allocation20 + $0x58] sm:$0xff] %v2319_v33 }
 0x5dd   :  { %v2321_v34 = vpop.eup %2320 }
 0x5de   :  { %1801 = vst [vmem:[#allocation20 + $0x60] sm:$0xff] %v2321_v34 }
 0x5df   :  { %2553 = shalt.err (!%p2550_p3)
}
 0x5e0   :  { %s2597_s7 = smov 896   ;;  %s2598_s9 = smov 56  }
 0x5e1   :  { %1814 = dma.vmem_to_hbm [thread:$0]  %s1809_s5, 1792, %s2865_s19, [#allocation7], %s2597_s7, %s2597_s7, %s2598_s9  }
 0x5e2   :  { %2576 = dma.done.wait [#allocation7], 1792  }
 0x5e3   :  { %2577 = vsyncadd [#allocation7], 4294965504 }
 0x5e4   :  { %1818 = vsyncpa [#allocation6], 1 }
 0x5e5   :  { %1819 = vsyncpa [#allocation9], 1 }
 0x5e6   :  { %1820 = vsyncpa [#allocation12], 1 }
 0x5e7   :  { %1821 = vsyncpa [#allocation15], 1 }
 0x5e8   :  { %1822 = vsyncpa [#allocation18], 1 }
 0x5e9   :  { %1823 = vsyncpa [#allocation7], 1 }
 0x5ea   :  { %1824 = vsyncmov [#allocation4] }
 0x5ed   :  { %s1825_s4 = vpop.sfrf %1824 }
 0x5ee   :  { %p1984_p4 = scmp.ne.s32.totalorder %s1825_s4, 0 }
 0x5f0   :  { %1829 = shalt.err (%p1984_p4)  }
 0x5f1   :  { %1831 = vsyncmov [#allocation4 + $0x1] }
 0x5f4   :  { %s1832_s25 = vpop.sfrf %1831 }
 0x5f5   :  { %p1985_p5 = scmp.ne.s32.totalorder %s1832_s25, 0 }
 0x5f7   :  { %1836 = shalt.err (%p1985_p5)  }

</bundles_post_ra>
